<compile_context>
chip_gen: v6e
topology: v6e:2x2x1
jax: 0.10.0
libtpu: 0.0.40
codegen_flags: <defaults>
</compile_context>

<pallas_src>
import functools

import jax
import jax.numpy as jnp
from jax.experimental import pallas as pl
from jax.experimental.pallas import tpu as pltpu


# ---------------------------------------------------------------------------
# Pass 1: depthwise + pointwise over one row strip, plus SE pooled-sum accum.
# ---------------------------------------------------------------------------
def _dwpw_kernel(x_ref, xh_ref, dww_ref, dwb_ref, pww_ref, pwb_ref,
                 y_ref, sums_ref, *, K, stride, strip_h, Wo, halo_rows,
                 mxu_dtype):
    """Grid = (batch, strip).

    x_ref   : (1, cur_rows, Wp, Cin)  current input strip
    xh_ref  : (1, hb, Wp, Cin)        halo rows from the next strip (unused if halo_rows==0)
    dww_ref : (K, K, Cin)             depthwise weights     dwb_ref: (1, Cin)
    pww_ref : (Cin, Cout)             pointwise weights     pwb_ref: (1, Cout)
    y_ref   : (1, strip_h, Wo, Cout)  un-scaled output strip
    sums_ref: (1, 1, Cout)            per-image channel sums (resident across strips)
    """
    s = pl.program_id(1)

    @pl.when(s == 0)
    def _init():
        sums_ref[...] = jnp.zeros_like(sums_ref)

    rows_needed = (strip_h - 1) * stride + K
    xcur = x_ref[0].astype(jnp.float32)                       # (cur_rows, Wp, Cin)
    if halo_rows > 0:
        x_full = jnp.concatenate(
            [xcur, xh_ref[0, :halo_rows].astype(jnp.float32)], axis=0)
    else:
        x_full = xcur[:rows_needed]

    cin = x_full.shape[-1]
    w = dww_ref[...].astype(jnp.float32)                      # (K, K, Cin)

    # Depthwise conv: unrolled shifted multiply-accumulate on the VPU (f32).
    acc = jnp.zeros((strip_h, Wo, cin), jnp.float32)
    if stride == 1:
        for dy in range(K):
            for dx in range(K):
                acc = acc + (x_full[dy:dy + strip_h, dx:dx + Wo, :]
                             * w[dy, dx, :][None, None, :])
    else:
        # Decimate along W once per column tap so only K strided slices are
        # materialized; the per-tap row slices are cheap major-dim selections.
        col_span = (Wo - 1) * stride + 1
        row_span = (strip_h - 1) * stride + 1
        cols = [x_full[:, dx:dx + col_span:stride, :] for dx in range(K)]
        for dy in range(K):
            for dx in range(K):
                acc = acc + (cols[dx][dy:dy + row_span:stride]
                             * w[dy, dx, :][None, None, :])
    acc = acc + dwb_ref[...].astype(jnp.float32)[0][None, None, :]

    # Pointwise 1x1 conv as a (strip_h*Wo, Cin) @ (Cin, Cout) MXU matmul with
    # bf16 operands by default (f32 accumulation).
    lhs = acc.reshape(strip_h * Wo, cin).astype(mxu_dtype)
    rhs = pww_ref[...].astype(mxu_dtype)
    y = jnp.dot(lhs, rhs, preferred_element_type=jnp.float32)
    y = y + pwb_ref[...].astype(jnp.float32)                  # (strip_h*Wo, Cout)

    # SE global-average-pool numerator, accumulated across strips (in f32,
    # before the intermediate is cast for the HBM writeback).
    sums_ref[...] += jnp.sum(y, axis=0, keepdims=True)[None]

    y_ref[0] = y.reshape(strip_h, Wo, -1).astype(y_ref.dtype)


# ---------------------------------------------------------------------------
# Pass 2: SE block — scale = sigmoid(fc2(relu(fc1(mean)))) applied per strip.
# ---------------------------------------------------------------------------
def _se_scale_kernel(y_ref, sums_ref, f1w_ref, f1b_ref, f2w_ref, f2b_ref,
                     o_ref, *, inv_hw):
    pooled = sums_ref[0].astype(jnp.float32) * inv_hw          # (1, Cout) mean
    h = jnp.dot(pooled, f1w_ref[...].astype(jnp.float32),
                preferred_element_type=jnp.float32) + f1b_ref[...].astype(jnp.float32)
    h = jnp.maximum(h, 0.0)
    h = jnp.dot(h, f2w_ref[...].astype(jnp.float32),
                preferred_element_type=jnp.float32) + f2b_ref[...].astype(jnp.float32)
    scale = jax.nn.sigmoid(h)                                  # (1, Cout)
    y = y_ref[0].astype(jnp.float32)                           # (strip_h, Wo, Cout)
    o_ref[0] = (y * scale.reshape(1, 1, -1)).astype(o_ref.dtype)


# ---------------------------------------------------------------------------
# Tiling helpers (VMEM-budget-aware strip sizing).
# ---------------------------------------------------------------------------
def _halo_block_rows(cur_rows, halo_rows):
    """Smallest divisor of cur_rows >= halo_rows (block height of the halo spec)."""
    if halo_rows <= 0:
        return 1
    return min(d for d in range(1, cur_rows + 1)
               if cur_rows % d == 0 and d >= halo_rows)


def _pass1_vmem_bytes(cur_rows, hb, strip_h, Wp, Cin, Wo, Cout, K):
    """Rough per-step VMEM footprint of pass 1 (lane/sublane padding aware)."""
    cpad = lambda c: -(-c // 128) * 128
    spad = lambda w: -(-w // 8) * 8
    ci, co = cpad(Cin), cpad(Cout)
    wp, wo = spad(Wp), spad(Wo)
    elems = (2 * (cur_rows + hb) * wp * ci            # double-buffered input (+halo)
             + 2 * strip_h * wo * co + 2 * co         # double-buffered outputs
             + (cur_rows + K) * wp * ci               # concatenated halo copy
             + (K + 2) * strip_h * wo * max(ci, co)   # tap temporaries / acc / y
             + K * K * ci + ci + 8 * co + 2 * co)     # weights
    return 4 * elems


def _pick_strip_h(Ho, K, stride, Hp, Wp, Cin, Wo, Cout, budget_bytes):
    """Largest divisor of Ho whose strip footprint fits the VMEM budget,
    preferring >= 2 strips so the DMA pipeline actually overlaps compute."""
    halo_rows = max(K - stride, 0)
    fitting = []
    for d in range(1, Ho + 1):
        if Ho % d:
            continue
        multi_strip = (Ho // d) > 1
        if multi_strip and d * stride < halo_rows:
            continue        # halo would not fit inside the neighbouring block
        cur_rows = d * stride if multi_strip else Hp
        hb = _halo_block_rows(cur_rows, halo_rows if multi_strip else 0)
        if _pass1_vmem_bytes(cur_rows, hb, d, Wp, Cin, Wo, Cout, K) <= budget_bytes:
            fitting.append(d)
    multi = [d for d in fitting if Ho // d >= 2]
    if multi:
        return max(multi)
    if fitting:
        return max(fitting)
    return Ho   # whole-image fallback (always correct; may spill for huge inputs)


# ---------------------------------------------------------------------------
# Wrapper (PyTorch NCHW interface).
# ---------------------------------------------------------------------------
def depthwise_separable_conv(x_nchw, params, *, kernel_size, stride=1, padding=0,
                             compute_dtype=jnp.bfloat16, strip_h=None):
    """Forward pass matching the PyTorch module. Input/Output are NCHW f32.

    compute_dtype: dtype of the MXU operands and of the un-scaled intermediate
    shipped between the two passes (bf16 by default; jnp.float32 for
    bit-faithful f32 math).
    """
    dww, dwb, pww, pwb, f1w, f1b, f2w, f2b = params
    N, Cin, H, W = x_nchw.shape
    K = kernel_size
    Cout = pww.shape[1]
    Ho = (H + 2 * padding - K) // stride + 1
    Wo = (W + 2 * padding - K) // stride + 1

    # TODO(synk): the NCHW<->NHWC transposes and the zero-pad below are plain
    # XLA copies kept only to match the PyTorch NCHW interface; in an NHWC
    # model graph they (and their HBM round trips) disappear.
    x = jnp.transpose(x_nchw, (0, 2, 3, 1))
    if padding:
        x = jnp.pad(x, ((0, 0), (padding, padding), (padding, padding), (0, 0)))
    Hp, Wp = x.shape[1], x.shape[2]

    # VMEM-capacity-aware strip selection: v7x (64 MiB) automatically gets
    # roughly half-height strips vs v5e/v6e (128 MiB).
    try:
        info = pltpu.get_tpu_info()
        vmem_cap = int(getattr(info, "vmem_capacity_bytes", 64 << 20))
    except Exception:
        vmem_cap = 64 << 20
    budget = max(vmem_cap // 4, 8 << 20)
    if strip_h is None:
        strip_h = _pick_strip_h(Ho, K, stride, Hp, Wp, Cin, Wo, Cout, budget)
    if Ho % strip_h:
        raise ValueError(f"strip_h={strip_h} must divide Ho={Ho}")
    n_strips = Ho // strip_h

    halo_rows = max(K - stride, 0) if n_strips > 1 else 0
    cur_rows = strip_h * stride if n_strips > 1 else Hp
    if halo_rows > cur_rows:
        raise ValueError("strip too short for the conv halo; use a larger strip_h")
    hb = _halo_block_rows(cur_rows, halo_rows)
    if halo_rows > 0:
        ratio = cur_rows // hb
        halo_index = lambda n, s: (n, (s + 1) * ratio, 0, 0)
    else:
        halo_index = lambda n, s: (n, 0, 0, 0)

    vmem_limit = int(min(max(2 * _pass1_vmem_bytes(cur_rows, hb, strip_h,
                                                   Wp, Cin, Wo, Cout, K),
                             32 << 20),
                         int(vmem_cap * 0.9)))

    use_bf16 = jnp.dtype(compute_dtype) == jnp.dtype(jnp.bfloat16)
    mxu_dtype = jnp.bfloat16 if use_bf16 else jnp.float32
    inter_dtype = jnp.bfloat16 if use_bf16 else jnp.float32

    def _full_spec(a):
        zeros = (0,) * a.ndim
        return pl.BlockSpec(a.shape, lambda *_: zeros)

    # ---- pass 1: depthwise + pointwise + SE pooled-sum accumulation ----
    y_unscaled, sums = pl.pallas_call(
        functools.partial(_dwpw_kernel, K=K, stride=stride, strip_h=strip_h,
                          Wo=Wo, halo_rows=halo_rows, mxu_dtype=mxu_dtype),
        out_shape=(jax.ShapeDtypeStruct((N, Ho, Wo, Cout), inter_dtype),
                   jax.ShapeDtypeStruct((N, 1, Cout), jnp.float32)),
        grid_spec=pltpu.PrefetchScalarGridSpec(
            num_scalar_prefetch=0,
            grid=(N, n_strips),
            in_specs=[
                pl.BlockSpec((1, cur_rows, Wp, Cin), lambda n, s: (n, s, 0, 0)),
                pl.BlockSpec((1, hb, Wp, Cin), halo_index),
                _full_spec(dww), _full_spec(dwb),
                _full_spec(pww), _full_spec(pwb),
            ],
            out_specs=[
                pl.BlockSpec((1, strip_h, Wo, Cout), lambda n, s: (n, s, 0, 0)),
                pl.BlockSpec((1, 1, Cout), lambda n, s: (n, 0, 0)),
            ],
        ),
        compiler_params=pltpu.CompilerParams(
            dimension_semantics=("parallel", "arbitrary"),
            vmem_limit_bytes=vmem_limit),
    )(x, x, dww, dwb, pww, pwb)

    # ---- pass 2: apply the SE scale per strip ----
    out_nhwc = pl.pallas_call(
        functools.partial(_se_scale_kernel, inv_hw=1.0 / float(Ho * Wo)),
        out_shape=jax.ShapeDtypeStruct((N, Ho, Wo, Cout), jnp.float32),
        grid_spec=pltpu.PrefetchScalarGridSpec(
            num_scalar_prefetch=0,
            grid=(N, n_strips),
            in_specs=[
                pl.BlockSpec((1, strip_h, Wo, Cout), lambda n, s: (n, s, 0, 0)),
                pl.BlockSpec((1, 1, Cout), lambda n, s: (n, 0, 0)),
                _full_spec(f1w), _full_spec(f1b),
                _full_spec(f2w), _full_spec(f2b),
            ],
            out_specs=pl.BlockSpec((1, strip_h, Wo, Cout),
                                   lambda n, s: (n, s, 0, 0)),
        ),
        compiler_params=pltpu.CompilerParams(
            dimension_semantics=("parallel", "parallel"),
            vmem_limit_bytes=vmem_limit),
    )(y_unscaled, sums, f1w, f1b, f2w, f2b)

    # NHWC -> NCHW
    return jnp.transpose(out_nhwc, (0, 3, 1, 2))


# ---------------------------------------------------------------------------
# Pure-JAX f32 reference mirroring the PyTorch forward.
# ---------------------------------------------------------------------------
def _reference(x_nchw, params, *, kernel_size, stride, padding):
    dww, dwb, pww, pwb, f1w, f1b, f2w, f2b = params
    N, Cin, H, W = x_nchw.shape
    K = kernel_size
    Ho = (H + 2 * padding - K) // stride + 1
    Wo = (W + 2 * padding - K) // stride + 1
    x = jnp.transpose(x_nchw, (0, 2, 3, 1)).astype(jnp.float32)
    x = jnp.pad(x, ((0, 0), (padding, padding), (padding, padding), (0, 0)))
    acc = jnp.zeros((N, Ho, Wo, Cin), jnp.float32)
    for dy in range(K):
        for dx in range(K):
            patch = x[:, dy: dy + (Ho - 1) * stride + 1: stride,
                      dx: dx + (Wo - 1) * stride + 1: stride, :]
            acc = acc + patch * dww[dy, dx, :][None, None, None, :]
    acc = acc + dwb[0][None, None, None, :]
    y = jnp.einsum("nhwc,cd->nhwd", acc, pww) + pwb[0][None, None, None, :]
    s = jnp.mean(y, axis=(1, 2), keepdims=True)
    s = jnp.maximum(jnp.einsum("nhwc,cd->nhwd", s, f1w) + f1b[0], 0.0)
    s = jax.nn.sigmoid(jnp.einsum("nhwc,cd->nhwd", s, f2w) + f2b[0])
    return jnp.transpose(y * s, (0, 3, 1, 2))


def _init_params(key, in_channels, out_channels, kernel_size, reduction=16):
    cr = max(out_channels // reduction, 1)
    keys = jax.random.split(key, 8)
    mk = lambda k, shape: (jax.random.normal(k, shape, jnp.float32) * 0.1)
    dww = mk(keys[0], (kernel_size, kernel_size, in_channels))  # depthwise (K,K,Cin)
    dwb = mk(keys[1], (1, in_channels))
    pww = mk(keys[2], (in_channels, out_channels))               # pointwise (Cin,Cout)
    pwb = mk(keys[3], (1, out_channels))
    f1w = mk(keys[4], (out_channels, cr))                        # SE fc1
    f1b = mk(keys[5], (1, cr))
    f2w = mk(keys[6], (cr, out_channels))                        # SE fc2
    f2b = mk(keys[7], (1, out_channels))
    return (dww, dwb, pww, pwb, f1w, f1b, f2w, f2b)


if __name__ == "__main__":
    key = jax.random.PRNGKey(0)
    k_x, k_p, k_x2, k_p2 = jax.random.split(key, 4)

    # Config A: multi-strip path (Ho=16 -> strip_h=8, 2 strips, 2-row halo).
    N, Cin, Cout, H, W = 2, 4, 8, 16, 16
    K, stride, padding = 3, 1, 1
    x = jax.random.normal(k_x, (N, Cin, H, W), jnp.float32)
    params = _init_params(k_p, Cin, Cout, K)
    ref = _reference(x, params, kernel_size=K, stride=stride, padding=padding)

    # Exact-semantics check (pure f32 path).
    out32 = depthwise_separable_conv(x, params, kernel_size=K, stride=stride,
                                     padding=padding, compute_dtype=jnp.float32)
    out32 = jax.block_until_ready(out32)
    assert out32.shape == (N, Cout, H, W), out32.shape
    err32 = float(jnp.max(jnp.abs(out32 - ref)))
    assert err32 < 2e-4, err32

    # Default fast path: bf16 MXU operands + bf16 intermediate, f32 accumulation.
    out16 = depthwise_separable_conv(x, params, kernel_size=K, stride=stride,
                                     padding=padding)
    out16 = jax.block_until_ready(out16)
    err16 = float(jnp.max(jnp.abs(out16 - ref)))
    assert err16 < 2e-2, err16

    # Config B: odd sizes, no padding -> exercises the single-strip fallback.
    N2, Cin2, Cout2, H2, W2 = 1, 3, 8, 9, 9
    x2 = jax.random.normal(k_x2, (N2, Cin2, H2, W2), jnp.float32)
    params2 = _init_params(k_p2, Cin2, Cout2, K)
    ref2 = _reference(x2, params2, kernel_size=K, stride=1, padding=0)
    out2 = depthwise_separable_conv(x2, params2, kernel_size=K, stride=1, padding=0)
    out2 = jax.block_until_ready(out2)
    err2 = float(jnp.max(jnp.abs(out2 - ref2)))
    assert out2.shape == (N2, Cout2, 7, 7), out2.shape
    assert err2 < 2e-2, err2

    print("KERNEL_OK")
</pallas_src>

<mosaic_0001>
module attributes {stable_mosaic.version = 11 : i64} {
  func.func @_dwpw_kernel(%arg0: i32, %arg1: i32, %arg2: memref<1x8x18x4xf32, #tpu.memory_space<vmem>>, %arg3: memref<1x2x18x4xf32, #tpu.memory_space<vmem>>, %arg4: memref<3x3x4xf32, #tpu.memory_space<vmem>>, %arg5: memref<1x4xf32, #tpu.memory_space<vmem>>, %arg6: memref<4x8xf32, #tpu.memory_space<vmem>>, %arg7: memref<1x8xf32, #tpu.memory_space<vmem>>, %arg8: memref<1x8x16x8xf32, #tpu.memory_space<vmem>>, %arg9: memref<1x1x8xf32, #tpu.memory_space<vmem>>) attributes {dimension_semantics = [#tpu.dimension_semantics<parallel>, #tpu.dimension_semantics<arbitrary>], iteration_bounds = array<i64: 2, 2>, scalar_prefetch = 0 : i64, scratch_operands = 0 : i64, tpu.core_type = #tpu.core_type<tc>, window_params = [{transform_indices = @transform_0, window_bounds = array<i64: 1, 8, 18, 4>}, {transform_indices = @transform_1, window_bounds = array<i64: 1, 2, 18, 4>}, {pipeline_mode = #tpu.pipeline_mode<synchronous>, transform_indices = @transform_2, window_bounds = array<i64: 3, 3, 4>}, {pipeline_mode = #tpu.pipeline_mode<synchronous>, transform_indices = @transform_3, window_bounds = array<i64: 1, 4>}, {pipeline_mode = #tpu.pipeline_mode<synchronous>, transform_indices = @transform_4, window_bounds = array<i64: 4, 8>}, {pipeline_mode = #tpu.pipeline_mode<synchronous>, transform_indices = @transform_5, window_bounds = array<i64: 1, 8>}, {transform_indices = @transform_6, window_bounds = array<i64: 1, 8, 16, 8>}, {transform_indices = @transform_7, window_bounds = array<i64: 1, 1, 8>}]} {
    %c0_i32 = arith.constant 0 : i32
    %0 = arith.cmpi eq, %arg1, %c0_i32 : i32
    %1 = arith.extui %0 : i1 to i32
    %c0_i32_0 = arith.constant 0 : i32
    %2 = arith.cmpi ne, %1, %c0_i32_0 : i32
    scf.if %2 {
      %cst_29 = arith.constant 0.000000e+00 : f32
      %94 = vector.broadcast %cst_29 : f32 to vector<1x1x8xf32>
      %c0_30 = arith.constant 0 : index
      %c0_31 = arith.constant 0 : index
      %c0_32 = arith.constant 0 : index
      %95 = vector.load %arg9[%c0_30, %c0_31, %c0_32] : memref<1x1x8xf32, #tpu.memory_space<vmem>>, vector<1x1x8xf32>
      tpu.vector_store %arg9[%c0_30, %c0_31, %c0_32], %94 {strides = array<i32>} : memref<1x1x8xf32, #tpu.memory_space<vmem>>, vector<1x1x8xf32>,
    } else {
    }
    %c0 = arith.constant 0 : index
    %c0_1 = arith.constant 0 : index
    %c0_2 = arith.constant 0 : index
    %c0_3 = arith.constant 0 : index
    %3 = vector.load %arg2[%c0, %c0_1, %c0_2, %c0_3] : memref<1x8x18x4xf32, #tpu.memory_space<vmem>>, vector<1x8x18x4xf32>
    %4 = vector.shape_cast %3 : vector<1x8x18x4xf32> to vector<8x18x4xf32>
    %c0_4 = arith.constant 0 : index
    %c0_5 = arith.constant 0 : index
    %c0_6 = arith.constant 0 : index
    %c0_7 = arith.constant 0 : index
    %5 = vector.load %arg3[%c0_4, %c0_5, %c0_6, %c0_7] : memref<1x2x18x4xf32, #tpu.memory_space<vmem>>, vector<1x2x18x4xf32>
    %6 = vector.shape_cast %5 : vector<1x2x18x4xf32> to vector<2x18x4xf32>
    %7 = tpu.concatenate %4, %6 in 0 : vector<8x18x4xf32>, vector<2x18x4xf32> -> vector<10x18x4xf32>
    %c0_8 = arith.constant 0 : index
    %c0_9 = arith.constant 0 : index
    %c0_10 = arith.constant 0 : index
    %8 = vector.load %arg4[%c0_8, %c0_9, %c0_10] : memref<3x3x4xf32, #tpu.memory_space<vmem>>, vector<3x3x4xf32>
    %cst = arith.constant 0.000000e+00 : f32
    %9 = vector.broadcast %cst : f32 to vector<8x16x4xf32>
    %10 = vector.extract_strided_slice %7 {offsets = [0, 0, 0], sizes = [8, 16, 4], strides = [1, 1, 1]} : vector<10x18x4xf32> to vector<8x16x4xf32>
    %11 = vector.extract_strided_slice %8 {offsets = [0, 0, 0], sizes = [1, 1, 4], strides = [1, 1, 1]} : vector<3x3x4xf32> to vector<1x1x4xf32>
    %12 = vector.shape_cast %11 : vector<1x1x4xf32> to vector<4xf32>
    %13 = vector.shape_cast %12 : vector<4xf32> to vector<1x1x4xf32>
    %14 = vector.broadcast %13 : vector<1x1x4xf32> to vector<8x16x4xf32>
    %15 = arith.mulf %10, %14 : vector<8x16x4xf32>
    %16 = arith.addf %9, %15 : vector<8x16x4xf32>
    %17 = vector.extract_strided_slice %7 {offsets = [0, 1, 0], sizes = [8, 16, 4], strides = [1, 1, 1]} : vector<10x18x4xf32> to vector<8x16x4xf32>
    %18 = vector.extract_strided_slice %8 {offsets = [0, 1, 0], sizes = [1, 1, 4], strides = [1, 1, 1]} : vector<3x3x4xf32> to vector<1x1x4xf32>
    %19 = vector.shape_cast %18 : vector<1x1x4xf32> to vector<4xf32>
    %20 = vector.shape_cast %19 : vector<4xf32> to vector<1x1x4xf32>
    %21 = vector.broadcast %20 : vector<1x1x4xf32> to vector<8x16x4xf32>
    %22 = arith.mulf %17, %21 : vector<8x16x4xf32>
    %23 = arith.addf %16, %22 : vector<8x16x4xf32>
    %24 = vector.extract_strided_slice %7 {offsets = [0, 2, 0], sizes = [8, 16, 4], strides = [1, 1, 1]} : vector<10x18x4xf32> to vector<8x16x4xf32>
    %25 = vector.extract_strided_slice %8 {offsets = [0, 2, 0], sizes = [1, 1, 4], strides = [1, 1, 1]} : vector<3x3x4xf32> to vector<1x1x4xf32>
    %26 = vector.shape_cast %25 : vector<1x1x4xf32> to vector<4xf32>
    %27 = vector.shape_cast %26 : vector<4xf32> to vector<1x1x4xf32>
    %28 = vector.broadcast %27 : vector<1x1x4xf32> to vector<8x16x4xf32>
    %29 = arith.mulf %24, %28 : vector<8x16x4xf32>
    %30 = arith.addf %23, %29 : vector<8x16x4xf32>
    %31 = vector.extract_strided_slice %7 {offsets = [1, 0, 0], sizes = [8, 16, 4], strides = [1, 1, 1]} : vector<10x18x4xf32> to vector<8x16x4xf32>
    %32 = vector.extract_strided_slice %8 {offsets = [1, 0, 0], sizes = [1, 1, 4], strides = [1, 1, 1]} : vector<3x3x4xf32> to vector<1x1x4xf32>
    %33 = vector.shape_cast %32 : vector<1x1x4xf32> to vector<4xf32>
    %34 = vector.shape_cast %33 : vector<4xf32> to vector<1x1x4xf32>
    %35 = vector.broadcast %34 : vector<1x1x4xf32> to vector<8x16x4xf32>
    %36 = arith.mulf %31, %35 : vector<8x16x4xf32>
    %37 = arith.addf %30, %36 : vector<8x16x4xf32>
    %38 = vector.extract_strided_slice %7 {offsets = [1, 1, 0], sizes = [8, 16, 4], strides = [1, 1, 1]} : vector<10x18x4xf32> to vector<8x16x4xf32>
    %39 = vector.extract_strided_slice %8 {offsets = [1, 1, 0], sizes = [1, 1, 4], strides = [1, 1, 1]} : vector<3x3x4xf32> to vector<1x1x4xf32>
    %40 = vector.shape_cast %39 : vector<1x1x4xf32> to vector<4xf32>
    %41 = vector.shape_cast %40 : vector<4xf32> to vector<1x1x4xf32>
    %42 = vector.broadcast %41 : vector<1x1x4xf32> to vector<8x16x4xf32>
    %43 = arith.mulf %38, %42 : vector<8x16x4xf32>
    %44 = arith.addf %37, %43 : vector<8x16x4xf32>
    %45 = vector.extract_strided_slice %7 {offsets = [1, 2, 0], sizes = [8, 16, 4], strides = [1, 1, 1]} : vector<10x18x4xf32> to vector<8x16x4xf32>
    %46 = vector.extract_strided_slice %8 {offsets = [1, 2, 0], sizes = [1, 1, 4], strides = [1, 1, 1]} : vector<3x3x4xf32> to vector<1x1x4xf32>
    %47 = vector.shape_cast %46 : vector<1x1x4xf32> to vector<4xf32>
    %48 = vector.shape_cast %47 : vector<4xf32> to vector<1x1x4xf32>
    %49 = vector.broadcast %48 : vector<1x1x4xf32> to vector<8x16x4xf32>
    %50 = arith.mulf %45, %49 : vector<8x16x4xf32>
    %51 = arith.addf %44, %50 : vector<8x16x4xf32>
    %52 = vector.extract_strided_slice %7 {offsets = [2, 0, 0], sizes = [8, 16, 4], strides = [1, 1, 1]} : vector<10x18x4xf32> to vector<8x16x4xf32>
    %53 = vector.extract_strided_slice %8 {offsets = [2, 0, 0], sizes = [1, 1, 4], strides = [1, 1, 1]} : vector<3x3x4xf32> to vector<1x1x4xf32>
    %54 = vector.shape_cast %53 : vector<1x1x4xf32> to vector<4xf32>
    %55 = vector.shape_cast %54 : vector<4xf32> to vector<1x1x4xf32>
    %56 = vector.broadcast %55 : vector<1x1x4xf32> to vector<8x16x4xf32>
    %57 = arith.mulf %52, %56 : vector<8x16x4xf32>
    %58 = arith.addf %51, %57 : vector<8x16x4xf32>
    %59 = vector.extract_strided_slice %7 {offsets = [2, 1, 0], sizes = [8, 16, 4], strides = [1, 1, 1]} : vector<10x18x4xf32> to vector<8x16x4xf32>
    %60 = vector.extract_strided_slice %8 {offsets = [2, 1, 0], sizes = [1, 1, 4], strides = [1, 1, 1]} : vector<3x3x4xf32> to vector<1x1x4xf32>
    %61 = vector.shape_cast %60 : vector<1x1x4xf32> to vector<4xf32>
    %62 = vector.shape_cast %61 : vector<4xf32> to vector<1x1x4xf32>
    %63 = vector.broadcast %62 : vector<1x1x4xf32> to vector<8x16x4xf32>
    %64 = arith.mulf %59, %63 : vector<8x16x4xf32>
    %65 = arith.addf %58, %64 : vector<8x16x4xf32>
    %66 = vector.extract_strided_slice %7 {offsets = [2, 2, 0], sizes = [8, 16, 4], strides = [1, 1, 1]} : vector<10x18x4xf32> to vector<8x16x4xf32>
    %67 = vector.extract_strided_slice %8 {offsets = [2, 2, 0], sizes = [1, 1, 4], strides = [1, 1, 1]} : vector<3x3x4xf32> to vector<1x1x4xf32>
    %68 = vector.shape_cast %67 : vector<1x1x4xf32> to vector<4xf32>
    %69 = vector.shape_cast %68 : vector<4xf32> to vector<1x1x4xf32>
    %70 = vector.broadcast %69 : vector<1x1x4xf32> to vector<8x16x4xf32>
    %71 = arith.mulf %66, %70 : vector<8x16x4xf32>
    %72 = arith.addf %65, %71 : vector<8x16x4xf32>
    %c0_11 = arith.constant 0 : index
    %c0_12 = arith.constant 0 : index
    %73 = vector.load %arg5[%c0_11, %c0_12] : memref<1x4xf32, #tpu.memory_space<vmem>>, vector<1x4xf32>
    %74 = vector.shape_cast %73 : vector<1x4xf32> to vector<4xf32>
    %75 = vector.shape_cast %74 : vector<4xf32> to vector<1x1x4xf32>
    %76 = vector.broadcast %75 : vector<1x1x4xf32> to vector<8x16x4xf32>
    %77 = arith.addf %72, %76 : vector<8x16x4xf32>
    %78 = vector.shape_cast %77 : vector<8x16x4xf32> to vector<128x4xf32>
    %c0_13 = arith.constant 0 : index
    %c0_14 = arith.constant 0 : index
    %79 = vector.load %arg6[%c0_13, %c0_14] : memref<4x8xf32, #tpu.memory_space<vmem>>, vector<4x8xf32>
    %cst_15 = arith.constant dense<0.000000e+00> : vector<128x8xf32>
    %80 = tpu.matmul %78, %79, %cst_15 {dimension_numbers = #tpu.dot_dimension_numbers<[1], [0], [0], [1], [0, 0, 1, 1], [], []>} : vector<128x4xf32>, vector<4x8xf32>, vector<128x8xf32> -> vector<128x8xf32>
    %c0_16 = arith.constant 0 : index
    %c0_17 = arith.constant 0 : index
    %81 = vector.load %arg7[%c0_16, %c0_17] : memref<1x8xf32, #tpu.memory_space<vmem>>, vector<1x8xf32>
    %82 = vector.broadcast %81 : vector<1x8xf32> to vector<128x8xf32>
    %83 = arith.addf %80, %82 : vector<128x8xf32>
    %c0_18 = arith.constant 0 : index
    %c0_19 = arith.constant 0 : index
    %c0_20 = arith.constant 0 : index
    %84 = vector.load %arg9[%c0_18, %c0_19, %c0_20] : memref<1x1x8xf32, #tpu.memory_space<vmem>>, vector<1x1x8xf32>
    %cst_21 = arith.constant dense<0.000000e+00> : vector<8xf32>
    %85 = vector.multi_reduction <add>, %83, %cst_21 [0] : vector<128x8xf32> to vector<8xf32>
    %86 = vector.shape_cast %85 : vector<8xf32> to vector<1x8xf32>
    %87 = vector.shape_cast %86 : vector<1x8xf32> to vector<1x1x8xf32>
    %88 = arith.addf %84, %87 : vector<1x1x8xf32>
    %c0_22 = arith.constant 0 : index
    %c0_23 = arith.constant 0 : index
    %c0_24 = arith.constant 0 : index
    %89 = vector.load %arg9[%c0_22, %c0_23, %c0_24] : memref<1x1x8xf32, #tpu.memory_space<vmem>>, vector<1x1x8xf32>
    tpu.vector_store %arg9[%c0_22, %c0_23, %c0_24], %88 {strides = array<i32>} : memref<1x1x8xf32, #tpu.memory_space<vmem>>, vector<1x1x8xf32>,
    %90 = vector.shape_cast %83 : vector<128x8xf32> to vector<8x16x8xf32>
    %c0_25 = arith.constant 0 : index
    %c0_26 = arith.constant 0 : index
    %c0_27 = arith.constant 0 : index
    %c0_28 = arith.constant 0 : index
    %91 = vector.load %arg8[%c0_25, %c0_26, %c0_27, %c0_28] : memref<1x8x16x8xf32, #tpu.memory_space<vmem>>, vector<1x8x16x8xf32>
    %92 = vector.shape_cast %91 : vector<1x8x16x8xf32> to vector<8x16x8xf32>
    %93 = vector.shape_cast %90 : vector<8x16x8xf32> to vector<1x8x16x8xf32>
    tpu.vector_store %arg8[%c0_25, %c0_26, %c0_27, %c0_28], %93 {strides = array<i32>} : memref<1x8x16x8xf32, #tpu.memory_space<vmem>>, vector<1x8x16x8xf32>,
    return
  }
  func.func @transform_0(%arg0: i32, %arg1: i32) -> (i32, i32, i32, i32) {
    %c0_i32 = arith.constant 0 : i32
    %c0_i32_0 = arith.constant 0 : i32
    %c0_i32_1 = arith.constant 0 : i32
    return %arg0, %arg1, %c0_i32, %c0_i32_0 : i32, i32, i32, i32
  }
  func.func @transform_1(%arg0: i32, %arg1: i32) -> (i32, i32, i32, i32) {
    %c1_i32 = arith.constant 1 : i32
    %0 = arith.addi %arg1, %c1_i32 : i32
    %c4_i32 = arith.constant 4 : i32
    %1 = arith.muli %0, %c4_i32 : i32
    %c0_i32 = arith.constant 0 : i32
    %c0_i32_0 = arith.constant 0 : i32
    %c0_i32_1 = arith.constant 0 : i32
    return %arg0, %1, %c0_i32, %c0_i32_0 : i32, i32, i32, i32
  }
  func.func @transform_2(%arg0: i32, %arg1: i32) -> (i32, i32, i32) {
    %c0_i32 = arith.constant 0 : i32
    %c0_i32_0 = arith.constant 0 : i32
    %c0_i32_1 = arith.constant 0 : i32
    %c0_i32_2 = arith.constant 0 : i32
    return %c0_i32, %c0_i32_0, %c0_i32_1 : i32, i32, i32
  }
  func.func @transform_3(%arg0: i32, %arg1: i32) -> (i32, i32) {
    %c0_i32 = arith.constant 0 : i32
    %c0_i32_0 = arith.constant 0 : i32
    %c0_i32_1 = arith.constant 0 : i32
    return %c0_i32, %c0_i32_0 : i32, i32
  }
  func.func @transform_4(%arg0: i32, %arg1: i32) -> (i32, i32) {
    %c0_i32 = arith.constant 0 : i32
    %c0_i32_0 = arith.constant 0 : i32
    %c0_i32_1 = arith.constant 0 : i32
    return %c0_i32, %c0_i32_0 : i32, i32
  }
  func.func @transform_5(%arg0: i32, %arg1: i32) -> (i32, i32) {
    %c0_i32 = arith.constant 0 : i32
    %c0_i32_0 = arith.constant 0 : i32
    %c0_i32_1 = arith.constant 0 : i32
    return %c0_i32, %c0_i32_0 : i32, i32
  }
  func.func @transform_6(%arg0: i32, %arg1: i32) -> (i32, i32, i32, i32) {
    %c0_i32 = arith.constant 0 : i32
    %c0_i32_0 = arith.constant 0 : i32
    %c0_i32_1 = arith.constant 0 : i32
    return %arg0, %arg1, %c0_i32, %c0_i32_0 : i32, i32, i32, i32
  }
  func.func @transform_7(%arg0: i32, %arg1: i32) -> (i32, i32, i32) {
    %c0_i32 = arith.constant 0 : i32
    %c0_i32_0 = arith.constant 0 : i32
    %c0_i32_1 = arith.constant 0 : i32
    return %arg0, %c0_i32, %c0_i32_0 : i32, i32, i32
  }
}

</mosaic_0001>

<bundles_post_ra>
// kernel: tpu_custom_call.1
= control target key start
LH: loop header
LB: loop body
LE: loop exit
PB: predicated region body
PF: predicated region fallthrough
CT: control target
= control target key end

     0   :  { %s2932_s0 = inlined_call_operand.vmem [shape: f32[2,18,18,4], index: 0, kind: input, shape index: {}]   ;;  %s2933_s1 = inlined_call_operand.vmem [shape: f32[2,18,18,4], index: 1, kind: input, shape index: {}]   ;;  %s2934_s2 = inlined_call_operand.vmem [shape: f32[3,3,4], index: 2, kind: input, shape index: {}]   ;;  %s2935_s3 = inlined_call_operand.vmem [shape: f32[1,4], index: 3, kind: input, shape index: {}]   ;;  %s2936_s4 = inlined_call_operand.vmem [shape: f32[4,8], index: 4, kind: input, shape index: {}]   ;;  %s2937_s5 = inlined_call_operand.vmem [shape: f32[1,8], index: 5, kind: input, shape index: {}]   ;;  %s2938_s6 = inlined_call_operand.vmem [shape: f32[2,16,16,8], index: 6, kind: output, shape index: {0}]   ;;  %s2939_s7 = inlined_call_operand.hbm [shape: f32[2,1,8], index: 7, kind: output, shape index: {1}]  }
   0x1   :  { %2949 = sst [smem:[#allocation14_spill]] %s2939_s7 }
   0x2   :  { %13 = vsyncpa [#allocation3], 0 }
   0x3   :  { %15 = vsyncpa [#allocation3 + $0x1], 0  ;;  %s2061_s24 = smov 0   ;;  %s2063_s25 = smov 0  }
   0x4   :  { %s2065_s26 = smov 0   ;;  %s2067_s27 = smov 0  }
   0x5   :  { %s2069_s28 = smov 0   ;;  %s2071_s29 = smov 0  }
   0x6   :  { %s2073_s30 = smov 0   ;;  %s2075_s8 = smov 0  }
   0x7 LB: > { %2950 = sst [smem:[#allocation5_spill]] %s1989_s24  ;;  %s1756_s9 = sadd.s32 4294967295, %s2017_s8   ;;  %s2017_s8 = sphi %s2075_s8, %s21_s8   ;;  %s2013_s30 = sphi %s2073_s30, %s2972_s30   ;;  %s2009_s29 = sphi %s2071_s29, %s2971_s29   ;;  %s2005_s28 = sphi %s2069_s28, %s2970_s28   ;;  %s2001_s27 = sphi %s2067_s27, %s2969_s27   ;;  %s1997_s26 = sphi %s2065_s26, %s2968_s26   ;;  %s1993_s25 = sphi %s2063_s25, %s2974_s25   ;;  %s1989_s24 = sphi %s2061_s24, %s2973_s24  }
   0x8   : > { %2951 = sst [smem:[#allocation6_spill]] %s1997_s26  ;;  %s1757_s10 = sadd.s32 4294967294, %s2017_s8  }
   0x9   : > { %2952 = sst [smem:[#allocation7_spill]] %s2009_s29  ;;  %s30_s11 = sadd.s32 1, %s2009_s29 }
   0xa   : > { %2953 = sst [smem:[#allocation8_spill]] %s2013_s30  ;;  %p31_p0 = scmp.ge.s32.totalorder %s30_s11, 2 }
   0xb   : > { %2954 = sst [smem:[#allocation9_spill]] %s2017_s8  ;;  %s33_s12 = sadd.s32 1, %s2013_s30 }
   0xc   : > { %p222_p1 = scmp.ne.s32.totalorder %s1997_s26, %s1993_s25  ;;  %p223_p2 = scmp.eq.s32.totalorder %s1756_s9, 3 }
   0xd   : > { %s2976_s11 = smov (%p31_p0, %s30_s11), 0  ;;  %s2978_s12 = smov (!%p31_p0, %s33_s12), %s2013_s30 }
   0xe   : > { %2955 = sst [smem:[#allocation10_spill]] %s2976_s11  ;;  %p2110_p3 = por %p223_p2, %p222_p1 }
   0xf   : > { %p228_p4 = scmp.ne.s32.totalorder %s1993_s25, %s1989_s24  ;;  %p35_p5 = scmp.ge.s32.totalorder %s2978_s12, 2 }
  0x10   : > { %p229_p6 = scmp.eq.s32.totalorder %s1757_s10, 3  ;;  %p1762_p7 = scmp.ge.s32.totalorder %s2017_s8, 1 }
  0x11   : > { %p301_p8 = scmp.lt.s32.totalorder %s2017_s8, 5  ;;  %s2980_s12 = smov (%p35_p5, %s2978_s12), 0 }
  0x12   : > { %2957 = sst [smem:[#allocation11_spill]] %s2980_s12  ;;  %p2120_p9 = por %p229_p6, %p228_p4 }
  0x13   : > { %p302_p10 = pnand %p1762_p7, %p301_p8  ;;  %s209_s15 = ssub.s32 %s2013_s30, %s2980_s12 }
  0x14   : > { %s2958_s14 = scalar_select %p2120_p9, 1, 0 }
  0x15   : > { %s212_s16 = sadd.s32 1, %s1997_s26  ;;  %p210_p11 = scmp.eq.s32.totalorder %s209_s15, 0 }
  0x16   : > { %2959 = sst [smem:[#allocation12_spill]] %s2958_s14  ;;  %305 = sbr.rel (%p302_p10) target bundleno = 440 (0x1b8), region = 44 }
  0x17   : > { %s2128_s17 = scalar_select %p210_p11, %s1997_s26, %s212_s16  }
  0x18   : > { %s1763_s19 = sshll.u32 (!%p302_p10), %s2001_s27, 3  ;;  %p370_p12 = scmp.lt.s32.totalorder (!%p302_p10), %s2005_s28, 1 }
  0x19   : > { %2960 = sst [smem:[#allocation13_spill]] %s2128_s17  ;;  %p372_p13 = scmp.lt.s32.totalorder (!%p302_p10), %s1763_s19, 17 }
  0x1a   : > { %s1803_s20 = sadd.s32 (!%p302_p10), 8, %s1763_s19  ;;  %p403_p1 = scmp.lt.s32.totalorder (!%p302_p10), %s1763_s19, 15 }
  0x1b   : > { %s371_s21 = scalar_select %p370_p12, %s2005_s28, 1 }
  0x1c   : > { %s373_s22 = scalar_select %p372_p13, %s1763_s19, 17 }
  0x1d   : > { %s1850_s23 = smul.u32 54, %s371_s21  ;;  %p390_p0 = scmp.lt.s32.totalorder %s1803_s20, 17 }
  0x1e   : > { %s1849_s9 = smul.u32 3, %s373_s22  ;;  %s1770_s24 = sshll.u32 %s371_s21, 5 }
  0x1f   : > { %s2982_s20 = smov (!%p390_p0, %s1803_s20), 17  ;;  %s2984_s19 = smov (!%p403_p1, %s1763_s19), 15 }
  0x20   : > { %s376_s10 = sadd.s32 %s1850_s23, %s1849_s9  ;;  %s1851_s16 = smul.u32 3, %s2982_s20 }
  0x21   : > { %s1764_s15 = sshll.u32 %s376_s10, 3  ;;  %s1769_s22 = sshll.u32 %s2984_s19, 1 }
  0x22   : > { %s2137_s30 = scalar_lea.vmem %s2932_s0, %s1764_s15  ;;  %s394_s18 = sadd.s32 %s1851_s16, %s1850_s23 }
  0x23   : > { %s1767_s29 = sshll.u32 %s394_s18, 3  ;;  %s407_s8 = sadd.s32 %s1770_s24, %s1769_s22 }
  0x24   : > { %s2142_s14 = scalar_lea.vmem %s2933_s1, %s1767_s29  ;;  %s1771_s9 = sshll.u32 %s407_s8, 3 }
  0x25   : > { %s2147_s7 = scalar_lea.vmem %s2938_s6, %s1771_s9  ;;  %s2961_s11 = sand.u32 1, %s1993_s25  }
  0x26   : > { %s2151_s12 = scalar_lea.vmem [#allocation2], %s2961_s11  ;;  %p1772_p2 = scmp.ne.s32.totalorder %s2001_s27, 0 }
  0x28   : > { %414 = sbr.rel (%p1772_p2) target bundleno = 47 (0x2f), region = 48 }
  0x2d   : > { %vm415_vm0 = vcmask 57344   ;;  %v2019_v0 = vmov 0.0  }
  0x2e   : > { %416 = vst.msk [vmem:[%s2151_s12] sm:$0x1] %vm415_vm0, %v2019_v0 }
  0x2f PF: > { %v1327_v1 = vld [vmem:[%s2936_s4] sm:$0xf]  ;;  %vm1384_vm1 = vcmask 1043456   ;;  %v450_v2 = vlaneseq  ;;  %v448_v5 = vld [vmem:[%s2934_s2 + $0x4] sm:$0x7]  ;;  %v418_v11 = vld [vmem:[%s2137_s30 + $0x8] sm:$0xff] }
  0x30   : > { %1821 = vmatprep.subr.msk.mxu0 %vm1384_vm1, %v1327_v1  ;;  %1847 = vmatprep.subr.msk.mxu1 %vm1384_vm1, %v1327_v1  ;;  %v447_v4 = vld [vmem:[%s2934_s2] sm:$0x7]  ;;  %v449_v6 = vld [vmem:[%s2934_s2 + $0x8] sm:$0x7]  ;;  %vm538_vm2 = vcmask 1046528   ;;  %vm663_vm3 = vcmask 1045504  }
  0x31   : > { %1822 = vmatpush3.msk.msra.mxu0 %vm1384_vm1, %v1327_v1  ;;  %v451_v3 = vshrl.u32 %v450_v2, 7  ;;  %1848 = vmatpush3.msk.msra.mxu1 %vm1384_vm1, %v1327_v1  ;;  %v417_v10 = vld [vmem:[%s2137_s30] sm:$0xff]  ;;  %v2184_v19 = vld [vmem:[%s2137_s30 + $0x18] sm:$0xff]  ;;  %v2203_v33 = vld [vmem:[%s2137_s30 + $0x30] sm:$0xff]  ;;  %vm1335_vm4 = vcmask 31744   ;;  %vm1534_vm5 = vcmask 64512  }
  0x32   : > { %v2187_v20 = vld [vmem:[%s2137_s30 + $0x20] sm:$0xff]  ;;  %v419_v42 = vld [vmem:[%s2137_s30 + $0x10] sm:$0x3]  ;;  %v2214_v43 = vld [vmem:[%s2137_s30 + $0x38] sm:$0xff]  ;;  %s1792_s22 = sshll.u32 %s2005_s28, 4  ;;  %s1618_s9 = sshll.u32 %s2151_s12, 4  ;;  %s1619_s9 = int_to_ptr.vmem [resolvable:$true] %s1618_s9 }
  0x33   : > { %v452_v7 = vsub.s32 0, %v451_v3  ;;  %v488_v8 = vsub.s32 1, %v451_v3  ;;  %v613_v9 = vsub.s32 2, %v451_v3  ;;  %v2233_v60 = vld [vmem:[%s2137_s30 + $0x28] sm:$0x3]  ;;  %vm1573_vm6 = vcmask 57344  }
  0x34   : > { %s2962_s20 = sld [smem:[#allocation14_spill]]  ;;  %s2963_s26 = sand.u32 1, %s1993_s25  }
  0x35   : > { %v2169_v12 = vrot.slane %v447_v4, %v452_v7  ;;  %v2171_v13 = vrot.slane %v447_v4, %v488_v8  ;;  %v2173_v14 = vrot.slane %v447_v4, %v613_v9  ;;  %v2175_v15 = vrot.slane %v448_v5, %v452_v7  ;;  %s1602_s29 = scalar_lea.sflag [#allocation3], %s2963_s26  ;;  %s1925_s24 = scalar_lea.vmem %s1619_s9, 16 }
  0x36   : > { %v2177_v16 = vrot.slane %v448_v5, %v488_v8  ;;  %v2179_v17 = vrot.slane %v448_v5, %v613_v9  ;;  %v2181_v18 = vrot.slane %v449_v6, %v452_v7  ;;  %v2192_v24 = vrot.slane %v449_v6, %v488_v8  ;;  %p1926_p4 = scmp.ne.s32.totalorder %s1619_s9, %s1925_s24  ;;  %s2020_s27 = smov [#allocation2]  }
  0x37   : > { %v490_v21 = vmul.f32 %v2171_v13, %v417_v10  ;;  %v491_v22 = vmul.f32 %v2171_v13, %v418_v11  ;;  %v615_v23 = vmul.f32 %v2173_v14, %v417_v10  ;;  %v454_v25 = vmul.f32 %v2169_v12, %v417_v10  ;;  %s1929_s8 = sshll.u32 %s2020_s27, 4  ;;  %s1930_s8 = int_to_ptr.vmem [resolvable:$false] %s1929_s8 }
  0x38   : > { %v616_v26 = vmul.f32 %v2173_v14, %v418_v11  ;;  %v776_v27 = vmul.f32 %v2177_v16, %v2184_v19  ;;  %v777_v28 = vmul.f32 %v2177_v16, %v2187_v20  ;;  %v900_v32 = vmul.f32 %v2179_v17, %v2184_v19  ;;  %p1927_p5 = pnand %p1926_p4, %p2110_p3  ;;  %s1931_s28 = scalar_lea.vmem %s1930_s8, 32 }
  0x39   : > { %v539_v29 = vrot.slane %v490_v21, 1  ;;  %v540_v30 = vrot.slane %v491_v22, 1  ;;  %v664_v31 = vrot.slane %v615_v23, 2  ;;  %v901_v37 = vmul.f32 %v2179_v17, %v2187_v20  ;;  %p1932_p7 = scmp.lt.s32.totalorder %s1619_s9, %s1930_s8  ;;  %p1933_p8 = scmp.lt.s32.totalorder %s1931_s28, %s1925_s24 }
  0x3a   : > { %v665_v34 = vrot.slane %v616_v26, 2  ;;  %v824_v35 = vrot.slane %v776_v27, 1  ;;  %v825_v36 = vrot.slane %v777_v28, 1  ;;  %v740_v39 = vmul.f32 %v2175_v15, %v2184_v19  ;;  %s1616_s11 = scalar_lea.hbm %s2962_s20, %s1792_s22  ;;  %p1928_p6 = pneg %p1927_p5 }
  0x3b   : > { %v541_v38 = vsel %vm538_vm2, %v539_v29, %v540_v30  ;;  %v948_v40 = vrot.slane %v900_v32, 2  ;;  %v1060_v41 = vmul.f32 %v2192_v24, %v2203_v33  ;;  %v949_v46 = vrot.slane %v901_v37, 2  ;;  %p1934_p10 = por %p1933_p8, %p1932_p7 }
  0x3c   : > { %v595_v44 = vadd.f32 %v541_v38, %v454_v25  ;;  %v666_v45 = vsel %vm663_vm3, %v664_v31, %v665_v34  ;;  %v1024_v47 = vmul.f32 %v2181_v18, %v2203_v33  ;;  %v826_v48 = vsel %vm538_vm2, %v824_v35, %v825_v36 }
  0x3d   : > { %v1061_v49 = vmul.f32 %v2192_v24, %v2214_v43  ;;  %v1108_v50 = vrot.slane %v1060_v41, 1  ;;  %v2222_v51 = vrot.slane %v449_v6, %v613_v9  ;;  %v455_v53 = vmul.f32 %v2169_v12, %v418_v11  ;;  %v2246_v11 = vld [vmem:[%s2137_s30 + $0x40] sm:$0x3]  ;;  %p1935_p11 = pnand %p1934_p10, %p1928_p6 }
  0x3e   : > { %v720_v52 = vadd.f32 %v666_v45, %v595_v44  ;;  %v492_v54 = vmul.f32 %v2171_v13, %v419_v42  ;;  %v617_v55 = vmul.f32 %v2173_v14, %v419_v42  ;;  %v950_v56 = vsel %vm663_vm3, %v948_v40, %v949_v46 }
  0x3f   : > { %v1109_v57 = vrot.slane %v1061_v49, 1  ;;  %v1184_v58 = vmul.f32 %v2222_v51, %v2203_v33  ;;  %v1185_v59 = vmul.f32 %v2222_v51, %v2214_v43  ;;  %v778_v0 = vmul.f32 %v2177_v16, %v2233_v60 }
  0x40   : > { %v756_v61 = vadd.f32 %v740_v39, %v720_v52  ;;  %v542_v62 = vrot.slane %v492_v54, 1  ;;  %v667_v63 = vrot.slane %v617_v55, 2  ;;  %v741_v3 = vmul.f32 %v2175_v15, %v2187_v20 }
  0x41   : > { %v1232_v1 = vrot.slane %v1184_v58, 2  ;;  %v1233_v2 = vrot.slane %v1185_v59, 2  ;;  %v902_v4 = vmul.f32 %v2179_v17, %v2233_v60  ;;  %v827_v8 = vrot.slane %v778_v0, 1 }
  0x42   : > { %v880_v5 = vadd.f32 %v826_v48, %v756_v61  ;;  %v543_v6 = vsel %vm538_vm2, %v540_v30, %v542_v62  ;;  %v668_v7 = vsel %vm663_vm3, %v665_v34, %v667_v63  ;;  %v1110_v9 = vsel %vm538_vm2, %v1108_v50, %v1109_v57 }
  0x43   : > { %v1234_v10 = vsel %vm663_vm3, %v1232_v1, %v1233_v2  ;;  %v596_v21 = vadd.f32 %v543_v6, %v455_v53  ;;  %v951_v22 = vrot.slane %v902_v4, 2  ;;  %v1025_v25 = vmul.f32 %v2181_v18, %v2214_v43  ;;  %v2296_v4 = vld [vmem:[%s2137_s30 + $0x50] sm:$0xff] }
  0x44   : > { %v1004_v23 = vadd.f32 %v950_v56, %v880_v5  ;;  %v1062_v26 = vmul.f32 %v2192_v24, %v2246_v11  ;;  %v1186_v27 = vmul.f32 %v2222_v51, %v2246_v11  ;;  %v828_v29 = vsel %vm538_vm2, %v825_v36, %v827_v8 }
  0x45   : > { %v721_v28 = vadd.f32 %v668_v7, %v596_v21  ;;  %v952_v30 = vsel %vm663_vm3, %v949_v46, %v951_v22  ;;  %v493_v31 = vmul.f32 %v2171_v13, %v2184_v19  ;;  %v456_v35 = vmul.f32 %v2169_v12, %v2184_v19  ;;  %v2275_v46 = vld [vmem:[%s2935_s3] ss:$0 sm:$0xff] }
  0x46   : > { %v1040_v32 = vadd.f32 %v1024_v47, %v1004_v23  ;;  %v1111_v34 = vrot.slane %v1062_v26, 1  ;;  %v2262_v37 = vmul.f32 %v2171_v13, %v2187_v20  ;;  %v618_v40 = vmul.f32 %v2173_v14, %v2184_v19 }
  0x47   : > { %v757_v38 = vadd.f32 %v741_v3, %v721_v28  ;;  %v544_v39 = vrot.slane %v493_v31, 1  ;;  %v2268_v36 = vmul.f32 %v2173_v14, %v2187_v20  ;;  %v1235_v44 = vrot.slane %v1186_v27, 2  ;;  %v2293_v3 = vld [vmem:[%s2137_s30 + $0x48] sm:$0xff] }
  0x48   : > { %v1164_v41 = vadd.f32 %v1110_v9, %v1040_v32  ;;  %v1112_v42 = vsel %vm538_vm2, %v1109_v57, %v1111_v34  ;;  %v545_v45 = vrot.slane %v2262_v37, 1  ;;  %v669_v48 = vrot.slane %v618_v40, 2 }
  0x49   : > { %v881_v47 = vadd.f32 %v828_v29, %v757_v38  ;;  %v670_v49 = vrot.slane %v2268_v36, 2  ;;  %v742_v19 = vmul.f32 %v2175_v15, %v2203_v33  ;;  %v779_v53 = vmul.f32 %v2177_v16, %v2203_v33 }
  0x4a   : > { %v1288_v50 = vadd.f32 %v1234_v10, %v1164_v41  ;;  %v546_v52 = vsel %vm538_vm2, %v544_v39, %v545_v45  ;;  %v780_v54 = vmul.f32 %v2177_v16, %v2214_v43  ;;  %v903_v58 = vmul.f32 %v2179_v17, %v2203_v33 }
  0x4b   : > { %v1005_v55 = vadd.f32 %v952_v30, %v881_v47  ;;  %v597_v56 = vadd.f32 %v546_v52, %v456_v35  ;;  %v671_v57 = vsel %vm663_vm3, %v669_v48, %v670_v49  ;;  %v829_v61 = vrot.slane %v779_v53, 1 }
  0x4c   : > { %v1311_v59 = vadd.f32 %v2275_v46, %v1288_v50  ;;  %v830_v62 = vrot.slane %v780_v54, 1  ;;  %v904_v63 = vmul.f32 %v2179_v17, %v2214_v43  ;;  %v1236_v1 = vsel %vm663_vm3, %v1233_v2, %v1235_v44  ;;  %v2325_v44 = vld [vmem:[%s2137_s30 + $0x58] sm:$0x3] }
  0x4d   : > { %v1041_v0 = vadd.f32 %v1025_v25, %v1005_v55  ;;  %v722_v5 = vadd.f32 %v671_v57, %v597_v56  ;;  %v953_v6 = vrot.slane %v903_v58, 2  ;;  %v1063_v9 = vmul.f32 %v2192_v24, %v2293_v3 }
  0x4e   : > { %1823 = vmatprep.mubr.msk.f32.mxu0 %vm1335_vm4, %v1311_v59  ;;  %v831_v7 = vsel %vm538_vm2, %v829_v61, %v830_v62  ;;  %v954_v8 = vrot.slane %v904_v63, 2  ;;  %v1064_v10 = vmul.f32 %v2192_v24, %v2296_v4  ;;  %v1187_v2 = vmul.f32 %v2222_v51, %v2293_v3 }
  0x4f   : > { %v1165_v21 = vadd.f32 %v1112_v42, %v1041_v0  ;;  %v758_v22 = vadd.f32 %v742_v19, %v722_v5  ;;  %v1188_v23 = vmul.f32 %v2222_v51, %v2296_v4  ;;  %v1026_v26 = vmul.f32 %v2181_v18, %v2293_v3 }
  0x50   : > { %v955_v25 = vsel %vm663_vm3, %v953_v6, %v954_v8  ;;  %v1113_v27 = vrot.slane %v1063_v9, 1  ;;  %v1114_v28 = vrot.slane %v1064_v10, 1  ;;  %v1237_v31 = vrot.slane %v1187_v2, 2 }
  0x51   : > { %v1289_v29 = vadd.f32 %v1236_v1, %v1165_v21  ;;  %v882_v30 = vadd.f32 %v831_v7, %v758_v22  ;;  %v1238_v32 = vrot.slane %v1188_v23, 2  ;;  %v457_v35 = vmul.f32 %v2169_v12, %v2187_v20 }
  0x52   : > { %v1115_v34 = vsel %vm538_vm2, %v1113_v27, %v1114_v28  ;;  %v495_v37 = vmul.f32 %v2171_v13, %v2233_v60  ;;  %v620_v38 = vmul.f32 %v2173_v14, %v2233_v60  ;;  %v743_v36 = vmul.f32 %v2175_v15, %v2214_v43 }
  0x53   : > { %v1312_v39 = vadd.f32 %v2275_v46, %v1289_v29  ;;  %v1006_v40 = vadd.f32 %v955_v25, %v882_v30  ;;  %v781_v41 = vmul.f32 %v2177_v16, %v2246_v11  ;;  %v1239_v42 = vsel %vm663_vm3, %v1237_v31, %v1238_v32 }
  0x54   : > { %v547_v20 = vrot.slane %v495_v37, 1  ;;  %v672_v47 = vrot.slane %v620_v38, 2  ;;  %v905_v48 = vmul.f32 %v2179_v17, %v2246_v11  ;;  %v1065_v50 = vmul.f32 %v2192_v24, %v2325_v44 }
  0x55   : > { %1824 = vmatmul.mubr.msk.f32.vlgmr.msra.gmra.mxu0 %vm1335_vm4, %v1312_v39  ;;  %v1042_v60 = vadd.f32 %v1026_v26, %v1006_v40  ;;  %v832_v19 = vrot.slane %v781_v41, 1  ;;  %v1189_v52 = vmul.f32 %v2222_v51, %v2325_v44  ;;  %v1027_v56 = vmul.f32 %v2181_v18, %v2296_v4  ;;  %v2370_v40 = vld [vmem:[%s2137_s30 + $0x60] sm:$0xff] }
  0x56   : > { %v548_v53 = vsel %vm538_vm2, %v545_v45, %v547_v20  ;;  %v673_v54 = vsel %vm663_vm3, %v670_v49, %v672_v47  ;;  %v956_v55 = vrot.slane %v905_v48, 2  ;;  %v1116_v59 = vrot.slane %v1065_v50, 1 }
  0x57   : > { %v1166_v57 = vadd.f32 %v1115_v34, %v1042_v60  ;;  %v598_v58 = vadd.f32 %v548_v53, %v457_v35  ;;  %v458_v61 = vmul.f32 %v2169_v12, %v2203_v33  ;;  %v833_v63 = vsel %vm538_vm2, %v830_v62, %v832_v19 }
  0x58   : > { %v957_v0 = vsel %vm663_vm3, %v954_v8, %v956_v55  ;;  %v496_v1 = vmul.f32 %v2171_v13, %v2203_v33  ;;  %v2346_v45 = vmul.f32 %v2171_v13, %v2214_v43  ;;  %v1240_v6 = vrot.slane %v1189_v52, 2 }
  0x59   : > { %v1290_v49 = vadd.f32 %v1239_v42, %v1166_v57  ;;  %v723_v5 = vadd.f32 %v673_v54, %v598_v58  ;;  %v621_v7 = vmul.f32 %v2173_v14, %v2203_v33  ;;  %v1117_v9 = vsel %vm538_vm2, %v1114_v28, %v1116_v59 }
  0x5a   : > { %v549_v10 = vrot.slane %v496_v1, 1  ;;  %v550_v62 = vrot.slane %v2346_v45, 1  ;;  %v622_v8 = vmul.f32 %v2173_v14, %v2214_v43  ;;  %v744_v23 = vmul.f32 %v2175_v15, %v2293_v3 }
  0x5b   : > { %v1313_v21 = vadd.f32 %v2275_v46, %v1290_v49  ;;  %v759_v22 = vadd.f32 %v743_v36, %v723_v5  ;;  %v674_v2 = vrot.slane %v621_v7, 2  ;;  %v782_v26 = vmul.f32 %v2177_v16, %v2293_v3  ;;  %v2373_v36 = vld [vmem:[%s2137_s30 + $0x68] sm:$0xff] }
  0x5c   : > { %v551_v25 = vsel %vm538_vm2, %v549_v10, %v550_v62  ;;  %v675_v33 = vrot.slane %v622_v8, 2  ;;  %v783_v27 = vmul.f32 %v2177_v16, %v2296_v4  ;;  %v906_v30 = vmul.f32 %v2179_v17, %v2293_v3  ;;  %v2403_v8 = vld [vmem:[%s2137_s30 + $0x70] sm:$0x3] }
  0x5d   : > { %1826 = vmatprep.mubr.msk.f32.mxu0 %vm1335_vm4, %v1313_v21  ;;  %v883_v28 = vadd.f32 %v833_v63, %v759_v22  ;;  %v599_v29 = vadd.f32 %v551_v25, %v458_v61  ;;  %v907_v31 = vmul.f32 %v2179_v17, %v2296_v4  ;;  %v1241_v34 = vsel %vm663_vm3, %v1238_v32, %v1240_v6 }
  0x5e   : > { %v676_v35 = vsel %vm663_vm3, %v674_v2, %v675_v33  ;;  %v834_v37 = vrot.slane %v782_v26, 1  ;;  %v835_v38 = vrot.slane %v783_v27, 1  ;;  %v958_v42 = vrot.slane %v906_v30, 2 }
  0x5f   : > { %v1007_v39 = vadd.f32 %v957_v0, %v883_v28  ;;  %v724_v41 = vadd.f32 %v676_v35, %v599_v29  ;;  %v959_v20 = vrot.slane %v907_v31, 2  ;;  %v1066_v48 = vmul.f32 %v2192_v24, %v2370_v40 }
  0x60   : > { %v836_v47 = vsel %vm538_vm2, %v834_v37, %v835_v38  ;;  %v1067_v32 = vmul.f32 %v2192_v24, %v2373_v36  ;;  %v1190_v60 = vmul.f32 %v2222_v51, %v2370_v40  ;;  %v1028_v52 = vmul.f32 %v2181_v18, %v2370_v40 }
  0x61   : > { %v1043_v19 = vadd.f32 %v1027_v56, %v1007_v39  ;;  %v760_v50 = vadd.f32 %v744_v23, %v724_v41  ;;  %v2386_v53 = vmul.f32 %v2222_v51, %v2373_v36  ;;  %v960_v54 = vsel %vm663_vm3, %v958_v42, %v959_v20 }
  0x62   : > { %v1118_v55 = vrot.slane %v1066_v48, 1  ;;  %v1119_v57 = vrot.slane %v1067_v32, 1  ;;  %v1242_v58 = vrot.slane %v1190_v60, 2  ;;  %v498_v56 = vmul.f32 %v2171_v13, %v2246_v11 }
  0x63   : > { %v1167_v59 = vadd.f32 %v1117_v9, %v1043_v19  ;;  %v884_v61 = vadd.f32 %v836_v47, %v760_v50  ;;  %v1243_v63 = vrot.slane %v2386_v53, 2  ;;  %v459_v1 = vmul.f32 %v2169_v12, %v2214_v43 }
  0x64   : > { %v1120_v0 = vsel %vm538_vm2, %v1118_v55, %v1119_v57  ;;  %v623_v45 = vmul.f32 %v2173_v14, %v2246_v11  ;;  %v784_v49 = vmul.f32 %v2177_v16, %v2325_v44  ;;  %v552_v7 = vrot.slane %v498_v56, 1 }
  0x65   : > { %v1291_v5 = vadd.f32 %v1241_v34, %v1167_v59  ;;  %v1008_v6 = vadd.f32 %v960_v54, %v884_v61  ;;  %v745_v9 = vmul.f32 %v2175_v15, %v2296_v4  ;;  %v1244_v10 = vsel %vm663_vm3, %v1242_v58, %v1243_v63 }
  0x66   : > { %v677_v21 = vrot.slane %v623_v45, 2  ;;  %v837_v22 = vrot.slane %v784_v49, 1  ;;  %v908_v43 = vmul.f32 %v2179_v17, %v2325_v44  ;;  %v553_v23 = vsel %vm538_vm2, %v550_v62, %v552_v7 }
  0x67   : > { %v1314_v11 = vadd.f32 %v2275_v46, %v1291_v5  ;;  %v1044_v2 = vadd.f32 %v1028_v52, %v1008_v6  ;;  %v1068_v25 = vmul.f32 %v2192_v24, %v2403_v8  ;;  %v600_v26 = vadd.f32 %v553_v23, %v459_v1  ;;  %v2449_v5 = vld [vmem:[%s2137_s30 + $0x78] sm:$0xff]  ;;  %v2452_v6 = vld [vmem:[%s2137_s30 + $0x80] sm:$0xff] }
  0x68   : > { %v678_v27 = vsel %vm663_vm3, %v675_v33, %v677_v21  ;;  %v961_v28 = vrot.slane %v908_v43, 2  ;;  %v1029_v29 = vmul.f32 %v2181_v18, %v2373_v36  ;;  %v838_v31 = vsel %vm538_vm2, %v835_v38, %v837_v22 }
  0x69   : > { %1827 = vmatmul.mubr.msk.f32.gmra.mxu0 %vm1335_vm4, %v1314_v11  ;;  %v1168_v30 = vadd.f32 %v1120_v0, %v1044_v2  ;;  %v1121_v34 = vrot.slane %v1068_v25, 1  ;;  %v1192_v35 = vmul.f32 %v2222_v51, %v2403_v8  ;;  %v725_v62 = vadd.f32 %v678_v27, %v600_v26 }
  0x6a   : > { %v460_v37 = vmul.f32 %v2169_v12, %v2293_v3  ;;  %v499_v33 = vmul.f32 %v2171_v13, %v2293_v3  ;;  %v2424_v39 = vmul.f32 %v2171_v13, %v2296_v4  ;;  %v962_v42 = vsel %vm663_vm3, %v959_v20, %v961_v28 }
  0x6b   : > { %v1292_v41 = vadd.f32 %v1244_v10, %v1168_v30  ;;  %v1245_v47 = vrot.slane %v1192_v35, 2  ;;  %v624_v38 = vmul.f32 %v2173_v14, %v2293_v3  ;;  %v761_v48 = vadd.f32 %v745_v9, %v725_v62 }
  0x6c   : > { %v554_v32 = vrot.slane %v499_v33, 1  ;;  %v555_v60 = vrot.slane %v2424_v39, 1  ;;  %v625_v19 = vmul.f32 %v2173_v14, %v2296_v4  ;;  %v1122_v52 = vsel %vm538_vm2, %v1119_v57, %v1121_v34 }
  0x6d   : > { %v1315_v50 = vadd.f32 %v2275_v46, %v1292_v41  ;;  %v679_v53 = vrot.slane %v624_v38, 2  ;;  %v746_v20 = vmul.f32 %v2175_v15, %v2370_v40  ;;  %v885_v54 = vadd.f32 %v838_v31, %v761_v48 }
  0x6e   : > { %v556_v3 = vsel %vm538_vm2, %v554_v32, %v555_v60  ;;  %v680_v55 = vrot.slane %v625_v19, 2  ;;  %v785_v58 = vmul.f32 %v2177_v16, %v2370_v40  ;;  %v786_v61 = vmul.f32 %v2177_v16, %v2373_v36 }
  0x6f   : > { %1829 = vmatprep.mubr.msk.f32.mxu0 %vm1335_vm4, %v1315_v50  ;;  %v601_v59 = vadd.f32 %v556_v3, %v460_v37  ;;  %v909_v57 = vmul.f32 %v2179_v17, %v2370_v40  ;;  %v910_v56 = vmul.f32 %v2179_v17, %v2373_v36  ;;  %v1009_v0 = vadd.f32 %v962_v42, %v885_v54  ;;  %v2485_v50 = vld [vmem:[%s2137_s30 + $0x88] sm:$0x3] }
  0x70   : > { %v1246_v1 = vsel %vm663_vm3, %v1243_v63, %v1245_v47  ;;  %v681_v45 = vsel %vm663_vm3, %v679_v53, %v680_v55  ;;  %v839_v49 = vrot.slane %v785_v58, 1  ;;  %v840_v9 = vrot.slane %v786_v61, 1 }
  0x71   : > { %v726_v7 = vadd.f32 %v681_v45, %v601_v59  ;;  %v963_v10 = vrot.slane %v909_v57, 2  ;;  %v964_v21 = vrot.slane %v910_v56, 2  ;;  %v1045_v22 = vadd.f32 %v1029_v29, %v1009_v0 }
  0x72   : > { %v1069_v43 = vmul.f32 %v2192_v24, %v2449_v5  ;;  %v1070_v11 = vmul.f32 %v2192_v24, %v2452_v6  ;;  %v1193_v63 = vmul.f32 %v2222_v51, %v2449_v5  ;;  %v841_v23 = vsel %vm538_vm2, %v839_v49, %v840_v9 }
  0x73   : > { %v762_v2 = vadd.f32 %v746_v20, %v726_v7  ;;  %v965_v25 = vsel %vm663_vm3, %v963_v10, %v964_v21  ;;  %v2464_v26 = vmul.f32 %v2222_v51, %v2452_v6  ;;  %v1169_v27 = vadd.f32 %v1122_v52, %v1045_v22 }
  0x74   : > { %v1123_v28 = vrot.slane %v1069_v43, 1  ;;  %v1124_v29 = vrot.slane %v1070_v11, 1  ;;  %v1247_v30 = vrot.slane %v1193_v63, 2  ;;  %v1030_v34 = vmul.f32 %v2181_v18, %v2449_v5 }
  0x75   : > { %v886_v31 = vadd.f32 %v841_v23, %v762_v2  ;;  %v1248_v35 = vrot.slane %v2464_v26, 2  ;;  %v501_v62 = vmul.f32 %v2171_v13, %v2325_v44  ;;  %v1293_v37 = vadd.f32 %v1246_v1, %v1169_v27 }
  0x76   : > { %v1125_v33 = vsel %vm538_vm2, %v1123_v28, %v1124_v29  ;;  %v461_v39 = vmul.f32 %v2169_v12, %v2296_v4  ;;  %v626_v41 = vmul.f32 %v2173_v14, %v2325_v44  ;;  %v747_v38 = vmul.f32 %v2175_v15, %v2373_v36 }
  0x77   : > { %v1010_v42 = vadd.f32 %v965_v25, %v886_v31  ;;  %v557_v47 = vrot.slane %v501_v62, 1  ;;  %v787_v48 = vmul.f32 %v2177_v16, %v2403_v8  ;;  %v1316_v32 = vadd.f32 %v2275_v46, %v1293_v37 }
  0x78   : > { %v1249_v19 = vsel %vm663_vm3, %v1247_v30, %v1248_v35  ;;  %v682_v4 = vrot.slane %v626_v41, 2  ;;  %v911_v44 = vmul.f32 %v2179_v17, %v2403_v8  ;;  %v1071_v54 = vmul.f32 %v2192_v24, %v2485_v50 }
  0x79   : > { %v1046_v52 = vadd.f32 %v1030_v34, %v1010_v42  ;;  %v558_v53 = vsel %vm538_vm2, %v555_v60, %v557_v47  ;;  %v842_v20 = vrot.slane %v787_v48, 1  ;;  %1830 = vmatmul.mubr.msk.f32.gmra.mxu0 %vm1335_vm4, %v1316_v32  ;;  %v1195_v61 = vmul.f32 %v2222_v51, %v2485_v50  ;;  %v2529_v47 = vld [vmem:[%s2137_s30 + $0x98] sm:$0xff] }
  0x7a   : > { %v602_v3 = vadd.f32 %v558_v53, %v461_v39  ;;  %v683_v58 = vsel %vm663_vm3, %v680_v55, %v682_v4  ;;  %v966_v59 = vrot.slane %v911_v44, 2  ;;  %v1031_v56 = vmul.f32 %v2181_v18, %v2452_v6 }
  0x7b   : > { %v1170_v57 = vadd.f32 %v1125_v33, %v1046_v52  ;;  %v1126_v0 = vrot.slane %v1071_v54, 1  ;;  %v843_v60 = vsel %vm538_vm2, %v840_v9, %v842_v20  ;;  %v462_v45 = vmul.f32 %v2169_v12, %v2370_v40  ;;  %v2525_v33 = vld [vmem:[%s2137_s30 + $0x90] sm:$0xff] }
  0x7c   : > { %v727_v1 = vadd.f32 %v683_v58, %v602_v3  ;;  %v502_v49 = vmul.f32 %v2171_v13, %v2370_v40  ;;  %v967_v55 = vsel %vm663_vm3, %v964_v21, %v966_v59  ;;  %v503_v10 = vmul.f32 %v2171_v13, %v2373_v36 }
  0x7d   : > { %v1294_v7 = vadd.f32 %v1249_v19, %v1170_v57  ;;  %v627_v22 = vmul.f32 %v2173_v14, %v2370_v40  ;;  %v1250_v11 = vrot.slane %v1195_v61, 2  ;;  %v628_v9 = vmul.f32 %v2173_v14, %v2373_v36 }
  0x7e   : > { %v763_v43 = vadd.f32 %v747_v38, %v727_v1  ;;  %v559_v63 = vrot.slane %v502_v49, 1  ;;  %v1127_v23 = vsel %vm538_vm2, %v1124_v29, %v1126_v0  ;;  %v560_v25 = vrot.slane %v503_v10, 1 }
  0x7f   : > { %v1317_v2 = vadd.f32 %v2275_v46, %v1294_v7  ;;  %v684_v21 = vrot.slane %v627_v22, 2  ;;  %v685_v28 = vrot.slane %v628_v9, 2  ;;  %v788_v30 = vmul.f32 %v2177_v16, %v2449_v5  ;;  %v2563_v9 = vld [vmem:[%s2137_s30 + $0xa0] sm:$0x3] }
  0x80   : > { %v887_v27 = vadd.f32 %v843_v60, %v763_v43  ;;  %v789_v40 = vmul.f32 %v2177_v16, %v2452_v6  ;;  %v561_v31 = vsel %vm538_vm2, %v559_v63, %v560_v25  ;;  %v748_v34 = vmul.f32 %v2175_v15, %v2449_v5 }
  0x81   : > { %1832 = vmatprep.mubr.msk.f32.mxu0 %vm1335_vm4, %v1317_v2  ;;  %v912_v29 = vmul.f32 %v2179_v17, %v2449_v5  ;;  %v913_v62 = vmul.f32 %v2179_v17, %v2452_v6  ;;  %v603_v39 = vadd.f32 %v561_v31, %v462_v45  ;;  %v686_v41 = vsel %vm663_vm3, %v684_v21, %v685_v28 }
  0x82   : > { %v1011_v37 = vadd.f32 %v967_v55, %v887_v27  ;;  %v844_v42 = vrot.slane %v788_v30, 1  ;;  %v845_v38 = vrot.slane %v789_v40, 1  ;;  %v1072_v19 = vmul.f32 %v2192_v24, %v2525_v33 }
  0x83   : > { %v968_v48 = vrot.slane %v912_v29, 2  ;;  %v969_v32 = vrot.slane %v913_v62, 2  ;;  %v728_v44 = vadd.f32 %v686_v41, %v603_v39  ;;  %v2535_v52 = vmul.f32 %v2192_v24, %v2529_v47 }
  0x84   : > { %v1047_v4 = vadd.f32 %v1031_v56, %v1011_v37  ;;  %v1196_v53 = vmul.f32 %v2222_v51, %v2525_v33  ;;  %v1251_v20 = vsel %vm663_vm3, %v1248_v35, %v1250_v11  ;;  %v846_v54 = vsel %vm538_vm2, %v844_v42, %v845_v38 }
  0x85   : > { %v1128_v3 = vrot.slane %v1072_v19, 1  ;;  %v2545_v58 = vmul.f32 %v2222_v51, %v2529_v47  ;;  %v764_v61 = vadd.f32 %v748_v34, %v728_v44  ;;  %v1032_v57 = vmul.f32 %v2181_v18, %v2525_v33 }
  0x86   : > { %v1171_v59 = vadd.f32 %v1127_v23, %v1047_v4  ;;  %v1129_v56 = vrot.slane %v2535_v52, 1  ;;  %v970_v0 = vsel %vm663_vm3, %v968_v48, %v969_v32  ;;  %v1252_v26 = vrot.slane %v1196_v53, 2 }
  0x87   : > { %v504_v35 = vmul.f32 %v2171_v13, %v2403_v8  ;;  %v629_v1 = vmul.f32 %v2173_v14, %v2403_v8  ;;  %v888_v45 = vadd.f32 %v846_v54, %v764_v61  ;;  %v1253_v49 = vrot.slane %v2545_v58, 2 }
  0x88   : > { %v1295_v60 = vadd.f32 %v1251_v20, %v1171_v59  ;;  %v463_v7 = vmul.f32 %v2169_v12, %v2373_v36  ;;  %v1130_v55 = vsel %vm538_vm2, %v1128_v3, %v1129_v56  ;;  %v790_v43 = vmul.f32 %v2177_v16, %v2485_v50 }
  0x89   : > { %v562_v10 = vrot.slane %v504_v35, 1  ;;  %v687_v22 = vrot.slane %v629_v1, 2  ;;  %v1012_v63 = vadd.f32 %v970_v0, %v888_v45  ;;  %v749_v8 = vmul.f32 %v2175_v15, %v2452_v6  ;;  %v2605_v45 = vld [vmem:[%s2137_s30 + $0xa8] sm:$0xff] }
  0x8a   : > { %v1318_v11 = vadd.f32 %v2275_v46, %v1295_v60  ;;  %v914_v2 = vmul.f32 %v2179_v17, %v2485_v50  ;;  %v847_v21 = vrot.slane %v790_v43, 1  ;;  %v1074_v27 = vmul.f32 %v2192_v24, %v2563_v9  ;;  %v2610_v43 = vld [vmem:[%s2137_s30 + $0xb0] sm:$0xff] }
  0x8b   : > { %v563_v36 = vsel %vm538_vm2, %v560_v25, %v562_v10  ;;  %v688_v23 = vsel %vm663_vm3, %v685_v28, %v687_v22  ;;  %v1048_v30 = vadd.f32 %v1032_v57, %v1012_v63  ;;  %v1198_v34 = vmul.f32 %v2222_v51, %v2563_v9 }
  0x8c   : > { %1833 = vmatmul.mubr.msk.f32.gmra.mxu0 %vm1335_vm4, %v1318_v11  ;;  %v604_v40 = vadd.f32 %v563_v36, %v463_v7  ;;  %v971_v31 = vrot.slane %v914_v2, 2  ;;  %v1254_v29 = vsel %vm663_vm3, %v1252_v26, %v1253_v49  ;;  %v848_v62 = vsel %vm538_vm2, %v845_v38, %v847_v21 }
  0x8d   : > { %v1033_v25 = vmul.f32 %v2181_v18, %v2529_v47  ;;  %v505_v28 = vmul.f32 %v2171_v13, %v2449_v5  ;;  %v1172_v37 = vadd.f32 %v1130_v55, %v1048_v30  ;;  %v1131_v41 = vrot.slane %v1074_v27, 1 }
  0x8e   : > { %v729_v39 = vadd.f32 %v688_v23, %v604_v40  ;;  %v464_v42 = vmul.f32 %v2169_v12, %v2449_v5  ;;  %v972_v48 = vsel %vm663_vm3, %v969_v32, %v971_v31  ;;  %v506_v19 = vmul.f32 %v2171_v13, %v2452_v6 }
  0x8f   : > { %v564_v4 = vrot.slane %v505_v28, 1  ;;  %v630_v38 = vmul.f32 %v2173_v14, %v2449_v5  ;;  %v1296_v44 = vadd.f32 %v1254_v29, %v1172_v37  ;;  %v1255_v53 = vrot.slane %v1198_v34, 2 }
  0x90   : > { %v765_v52 = vadd.f32 %v749_v8, %v729_v39  ;;  %v631_v20 = vmul.f32 %v2173_v14, %v2452_v6  ;;  %v565_v54 = vrot.slane %v506_v19, 1  ;;  %v750_v58 = vmul.f32 %v2175_v15, %v2525_v33 }
  0x91   : > { %v689_v3 = vrot.slane %v630_v38, 2  ;;  %v791_v32 = vmul.f32 %v2177_v16, %v2525_v33  ;;  %v1319_v59 = vadd.f32 %v2275_v46, %v1296_v44  ;;  %v792_v57 = vmul.f32 %v2177_v16, %v2529_v47 }
  0x92   : > { %v889_v61 = vadd.f32 %v848_v62, %v765_v52  ;;  %v690_v5 = vrot.slane %v631_v20, 2  ;;  %v566_v0 = vsel %vm538_vm2, %v564_v4, %v565_v54  ;;  %v915_v35 = vmul.f32 %v2179_v17, %v2525_v33 }
  0x93   : > { %v849_v26 = vrot.slane %v791_v32, 1  ;;  %v916_v1 = vmul.f32 %v2179_v17, %v2529_v47  ;;  %1835 = vmatprep.mubr.msk.f32.mxu1 %vm1335_vm4, %v1319_v59  ;;  %v605_v7 = vadd.f32 %v566_v0, %v464_v42  ;;  %v850_v10 = vrot.slane %v792_v57, 1 }
  0x94   : > { %v1013_v60 = vadd.f32 %v972_v48, %v889_v61  ;;  %v691_v55 = vsel %vm663_vm3, %v689_v3, %v690_v5  ;;  %v1132_v22 = vsel %vm538_vm2, %v1129_v56, %v1131_v41  ;;  %v973_v11 = vrot.slane %v915_v35, 2 }
  0x95   : > { %v974_v63 = vrot.slane %v916_v1, 2  ;;  %v1075_v8 = vmul.f32 %v2192_v24, %v2605_v45  ;;  %v1256_v36 = vsel %vm663_vm3, %v1253_v49, %v1255_v53  ;;  %v730_v23 = vadd.f32 %v691_v55, %v605_v7  ;;  %v2642_v53 = vld [vmem:[%s2137_s30 + $0xb8] sm:$0x3] }
  0x96   : > { %v1049_v2 = vadd.f32 %v1033_v25, %v1013_v60  ;;  %v2617_v21 = vmul.f32 %v2192_v24, %v2610_v43  ;;  %v851_v27 = vsel %vm538_vm2, %v849_v26, %v850_v10  ;;  %v1199_v56 = vmul.f32 %v2222_v51, %v2605_v45 }
  0x97   : > { %v1133_v30 = vrot.slane %v1075_v8, 1  ;;  %v2624_v40 = vmul.f32 %v2222_v51, %v2610_v43  ;;  %v766_v34 = vadd.f32 %v750_v58, %v730_v23  ;;  %v1034_v49 = vmul.f32 %v2181_v18, %v2605_v45 }
  0x98   : > { %v1173_v31 = vadd.f32 %v1132_v22, %v1049_v2  ;;  %v1134_v29 = vrot.slane %v2617_v21, 1  ;;  %v975_v62 = vsel %vm663_vm3, %v973_v11, %v974_v63  ;;  %v465_v25 = vmul.f32 %v2169_v12, %v2452_v6 }
  0x99   : > { %v507_v28 = vmul.f32 %v2171_v13, %v2485_v50  ;;  %v632_v37 = vmul.f32 %v2173_v14, %v2485_v50  ;;  %v890_v41 = vadd.f32 %v851_v27, %v766_v34  ;;  %v1257_v42 = vrot.slane %v1199_v56, 2 }
  0x9a   : > { %v1297_v39 = vadd.f32 %v1256_v36, %v1173_v31  ;;  %v1258_v48 = vrot.slane %v2624_v40, 2  ;;  %v1135_v19 = vsel %vm538_vm2, %v1133_v30, %v1134_v29  ;;  %v793_v44 = vmul.f32 %v2177_v16, %v2563_v9 }
  0x9b   : > { %v567_v4 = vrot.slane %v507_v28, 1  ;;  %v692_v38 = vrot.slane %v632_v37, 2  ;;  %v1014_v52 = vadd.f32 %v975_v62, %v890_v41  ;;  %v751_v50 = vmul.f32 %v2175_v15, %v2529_v47  ;;  %v2684_v41 = vld [vmem:[%s2142_s14] sm:$0xff] }
  0x9c   : > { %v1320_v6 = vadd.f32 %v2275_v46, %v1297_v39  ;;  %v917_v20 = vmul.f32 %v2179_v17, %v2563_v9  ;;  %v852_v32 = vrot.slane %v793_v44, 1  ;;  %v1077_v59 = vmul.f32 %v2192_v24, %v2642_v53  ;;  %v2689_v44 = vld [vmem:[%s2142_s14 + $0x8] sm:$0xff] }
  0x9d   : > { %v568_v3 = vsel %vm538_vm2, %v565_v54, %v567_v4  ;;  %v693_v58 = vsel %vm663_vm3, %v690_v5, %v692_v38  ;;  %v1050_v61 = vadd.f32 %v1034_v49, %v1014_v52  ;;  %v1201_v26 = vmul.f32 %v2222_v51, %v2642_v53 }
  0x9e   : > { %1836 = vmatmul.mubr.msk.f32.vlgmr.msra.gmra.mxu1 %vm1335_vm4, %v1320_v6  ;;  %v606_v57 = vadd.f32 %v568_v3, %v465_v25  ;;  %v976_v0 = vrot.slane %v917_v20, 2  ;;  %v1259_v35 = vsel %vm663_vm3, %v1257_v42, %v1258_v48  ;;  %v853_v1 = vsel %vm538_vm2, %v850_v10, %v852_v32 }
  0x9f   : > { %v1035_v54 = vmul.f32 %v2181_v18, %v2610_v43  ;;  %v508_v5 = vmul.f32 %v2171_v13, %v2525_v33  ;;  %v1174_v60 = vadd.f32 %v1135_v19, %v1050_v61  ;;  %v1136_v55 = vrot.slane %v1077_v59, 1 }
  0xa0   : > { %v731_v7 = vadd.f32 %v693_v58, %v606_v57  ;;  %v466_v22 = vmul.f32 %v2169_v12, %v2525_v33  ;;  %v977_v11 = vsel %vm663_vm3, %v974_v63, %v976_v0  ;;  %v509_v8 = vmul.f32 %v2171_v13, %v2529_v47 }
  0xa1   : > { %v569_v2 = vrot.slane %v508_v5, 1  ;;  %v633_v10 = vmul.f32 %v2173_v14, %v2525_v33  ;;  %v1298_v36 = vadd.f32 %v1259_v35, %v1174_v60  ;;  %v1260_v21 = vrot.slane %v1201_v26, 2 }
  0xa2   : > { %v767_v23 = vadd.f32 %v751_v50, %v731_v7  ;;  %v634_v27 = vmul.f32 %v2173_v14, %v2529_v47  ;;  %v570_v30 = vrot.slane %v509_v8, 1  ;;  %v752_v40 = vmul.f32 %v2175_v15, %v2605_v45 }
  0xa3   : > { %v694_v56 = vrot.slane %v633_v10, 2  ;;  %v794_v63 = vmul.f32 %v2177_v16, %v2605_v45  ;;  %v1321_v31 = vadd.f32 %v2275_v46, %v1298_v36  ;;  %v795_v49 = vmul.f32 %v2177_v16, %v2610_v43 }
  0xa4   : > { %v891_v34 = vadd.f32 %v853_v1, %v767_v23  ;;  %v695_v33 = vrot.slane %v634_v27, 2  ;;  %v571_v62 = vsel %vm538_vm2, %v569_v2, %v570_v30  ;;  %v918_v28 = vmul.f32 %v2179_v17, %v2605_v45 }
  0xa5   : > { %v854_v25 = vrot.slane %v794_v63, 1  ;;  %v919_v37 = vmul.f32 %v2179_v17, %v2610_v43  ;;  %1838 = vmatprep.mubr.msk.f32.mxu1 %vm1335_vm4, %v1321_v31  ;;  %v607_v42 = vadd.f32 %v571_v62, %v466_v22  ;;  %v855_v4 = vrot.slane %v795_v49, 1 }
  0xa6   : > { %v1015_v39 = vadd.f32 %v977_v11, %v891_v34  ;;  %v696_v19 = vsel %vm663_vm3, %v694_v56, %v695_v33  ;;  %v1137_v38 = vsel %vm538_vm2, %v1134_v29, %v1136_v55  ;;  %v978_v6 = vrot.slane %v918_v28, 2 }
  0xa7   : > { %v979_v52 = vrot.slane %v919_v37, 2  ;;  %v1078_v50 = vmul.f32 %v2192_v24, %v2684_v41  ;;  %v1261_v3 = vsel %vm663_vm3, %v1258_v48, %v1260_v21  ;;  %v732_v58 = vadd.f32 %v696_v19, %v607_v42  ;;  %v2723_v21 = vld [vmem:[%s2142_s14 + $0x10] sm:$0x3] }
  0xa8   : > { %v1051_v20 = vadd.f32 %v1035_v54, %v1015_v39  ;;  %v2696_v32 = vmul.f32 %v2192_v24, %v2689_v44  ;;  %v856_v59 = vsel %vm538_vm2, %v854_v25, %v855_v4  ;;  %v1202_v29 = vmul.f32 %v2222_v51, %v2684_v41 }
  0xa9   : > { %v1138_v61 = vrot.slane %v1078_v50, 1  ;;  %v2703_v57 = vmul.f32 %v2222_v51, %v2689_v44  ;;  %v768_v26 = vadd.f32 %v752_v40, %v732_v58  ;;  %v1036_v48 = vmul.f32 %v2181_v18, %v2684_v41 }
  0xaa   : > { %v1175_v0 = vadd.f32 %v1137_v38, %v1051_v20  ;;  %v1139_v35 = vrot.slane %v2696_v32, 1  ;;  %v980_v1 = vsel %vm663_vm3, %v978_v6, %v979_v52  ;;  %v467_v54 = vmul.f32 %v2169_v12, %v2529_v47 }
  0xab   : > { %v510_v5 = vmul.f32 %v2171_v13, %v2563_v9  ;;  %v635_v60 = vmul.f32 %v2173_v14, %v2563_v9  ;;  %v892_v55 = vadd.f32 %v856_v59, %v768_v26  ;;  %v1262_v22 = vrot.slane %v1202_v29, 2 }
  0xac   : > { %v1299_v7 = vadd.f32 %v1261_v3, %v1175_v0  ;;  %v1263_v11 = vrot.slane %v2703_v57, 2  ;;  %v1140_v8 = vsel %vm538_vm2, %v1138_v61, %v1139_v35  ;;  %v796_v47 = vmul.f32 %v2177_v16, %v2642_v53 }
  0xad   : > { %v572_v2 = vrot.slane %v510_v5, 1  ;;  %v697_v10 = vrot.slane %v635_v60, 2  ;;  %v1016_v23 = vadd.f32 %v980_v1, %v892_v55  ;;  %v753_v9 = vmul.f32 %v2175_v15, %v2610_v43  ;;  %v444_v1 = vld [vmem:[%s2142_s14 + $0x18] sm:$0xff]  ;;  %v2760_v5 = vld [vmem:[%s2142_s14 + $0x20] sm:$0xff] }
  0xae   : > { %v1322_v36 = vadd.f32 %v2275_v46, %v1299_v7  ;;  %v920_v27 = vmul.f32 %v2179_v17, %v2642_v53  ;;  %v857_v63 = vrot.slane %v796_v47, 1  ;;  %v1080_v31 = vmul.f32 %v2192_v24, %v2723_v21 }
  0xaf   : > { %v573_v56 = vsel %vm538_vm2, %v570_v30, %v572_v2  ;;  %v698_v40 = vsel %vm663_vm3, %v695_v33, %v697_v10  ;;  %v1052_v34 = vadd.f32 %v1036_v48, %v1016_v23  ;;  %v1204_v25 = vmul.f32 %v2222_v51, %v2723_v21 }
  0xb0   : > { %1839 = vmatmul.mubr.msk.f32.gmra.mxu1 %vm1335_vm4, %v1322_v36  ;;  %v608_v49 = vadd.f32 %v573_v56, %v467_v54  ;;  %v981_v62 = vrot.slane %v920_v27, 2  ;;  %v1264_v28 = vsel %vm663_vm3, %v1262_v22, %v1263_v11  ;;  %v858_v37 = vsel %vm538_vm2, %v855_v4, %v857_v63 }
  0xb1   : > { %v1037_v30 = vmul.f32 %v2181_v18, %v2689_v44  ;;  %v511_v33 = vmul.f32 %v2171_v13, %v2605_v45  ;;  %v1176_v39 = vadd.f32 %v1140_v8, %v1052_v34  ;;  %v1141_v19 = vrot.slane %v1080_v31, 1 }
  0xb2   : > { %v733_v42 = vadd.f32 %v698_v40, %v608_v49  ;;  %v468_v38 = vmul.f32 %v2169_v12, %v2605_v45  ;;  %v982_v6 = vsel %vm663_vm3, %v979_v52, %v981_v62  ;;  %v512_v50 = vmul.f32 %v2171_v13, %v2610_v43 }
  0xb3   : > { %v574_v4 = vrot.slane %v511_v33, 1  ;;  %v636_v20 = vmul.f32 %v2173_v14, %v2605_v45  ;;  %v1300_v3 = vadd.f32 %v1264_v28, %v1176_v39  ;;  %v1265_v59 = vrot.slane %v1204_v25, 2 }
  0xb4   : > { %v769_v58 = vadd.f32 %v753_v9, %v733_v42  ;;  %v637_v61 = vmul.f32 %v2173_v14, %v2610_v43  ;;  %v575_v29 = vrot.slane %v512_v50, 1  ;;  %v754_v0 = vmul.f32 %v2175_v15, %v2684_v41 }
  0xb5   : > { %v699_v57 = vrot.slane %v636_v20, 2  ;;  %v797_v52 = vmul.f32 %v2177_v16, %v2684_v41  ;;  %v1323_v26 = vadd.f32 %v2275_v46, %v1300_v3  ;;  %v798_v45 = vmul.f32 %v2177_v16, %v2689_v44 }
  0xb6   : > { %v893_v48 = vadd.f32 %v858_v37, %v769_v58  ;;  %v700_v54 = vrot.slane %v637_v61, 2  ;;  %v576_v60 = vsel %vm538_vm2, %v574_v4, %v575_v29  ;;  %v921_v55 = vmul.f32 %v2179_v17, %v2684_v41  ;;  %v446_v58 = vld [vmem:[%s2142_s14 + $0x28] sm:$0x3] }
  0xb7   : > { %v859_v7 = vrot.slane %v797_v52, 1  ;;  %v922_v22 = vmul.f32 %v2179_v17, %v2689_v44  ;;  %1841 = vmatprep.mubr.msk.f32.mxu1 %vm1335_vm4, %v1323_v26  ;;  %v609_v2 = vadd.f32 %v576_v60, %v468_v38  ;;  %v860_v47 = vrot.slane %v798_v45, 1 }
  0xb8   : > { %v1017_v8 = vadd.f32 %v982_v6, %v893_v48  ;;  %v701_v10 = vsel %vm663_vm3, %v699_v57, %v700_v54  ;;  %v1142_v36 = vsel %vm538_vm2, %v1139_v35, %v1141_v19  ;;  %v983_v23 = vrot.slane %v921_v55, 2 }
  0xb9   : > { %v984_v9 = vrot.slane %v922_v22, 2  ;;  %v1081_v27 = vmul.f32 %v2192_v24, %v444_v1  ;;  %v734_v41 = vadd.f32 %v701_v10, %v609_v2  ;;  %v1082_v40 = vmul.f32 %v2192_v24, %v2760_v5 }
  0xba   : > { %v1053_v56 = vadd.f32 %v1037_v30, %v1017_v8  ;;  %v1266_v63 = vsel %vm663_vm3, %v1263_v11, %v1265_v59  ;;  %v861_v31 = vsel %vm538_vm2, %v859_v7, %v860_v47  ;;  %v1205_v34 = vmul.f32 %v2222_v51, %v444_v1 }
  0xbb   : > { %v1206_v32 = vmul.f32 %v2222_v51, %v2760_v5  ;;  %v770_v35 = vadd.f32 %v754_v0, %v734_v41  ;;  %v985_v62 = vsel %vm663_vm3, %v983_v23, %v984_v9  ;;  %v1038_v25 = vmul.f32 %v2181_v18, %v444_v1 }
  0xbc   : > { %v1177_v49 = vadd.f32 %v1142_v36, %v1053_v56  ;;  %v1143_v28 = vrot.slane %v1081_v27, 1  ;;  %v1144_v37 = vrot.slane %v1082_v40, 1  ;;  %v513_v30 = vmul.f32 %v2171_v13, %v2642_v53 }
  0xbd   : > { %v638_v11 = vmul.f32 %v2173_v14, %v2642_v53  ;;  %v894_v39 = vadd.f32 %v861_v31, %v770_v35  ;;  %v1267_v42 = vrot.slane %v1205_v34, 2  ;;  %v469_v19 = vmul.f32 %v2169_v12, %v2610_v43 }
  0xbe   : > { %v1301_v33 = vadd.f32 %v1266_v63, %v1177_v49  ;;  %v1268_v38 = vrot.slane %v1206_v32, 2  ;;  %v577_v6 = vrot.slane %v513_v30, 1  ;;  %v799_v4 = vmul.f32 %v2177_v16, %v2723_v21 }
  0xbf   : > { %v702_v50 = vrot.slane %v638_v11, 2  ;;  %v1018_v3 = vadd.f32 %v985_v62, %v894_v39  ;;  %v923_v13 = vmul.f32 %v2179_v17, %v2723_v21  ;;  %v1145_v14 = vsel %vm538_vm2, %v1143_v28, %v1144_v37 }
  0xc0   : > { %v1324_v20 = vadd.f32 %v2275_v46, %v1301_v33  ;;  %v578_v53 = vsel %vm538_vm2, %v575_v29, %v577_v6  ;;  %v862_v12 = vrot.slane %v799_v4, 1  ;;  %v755_v16 = vmul.f32 %v2175_v15, %v2689_v44  ;;  %v1924_v15 = vld [vmem:[%s2935_s3] ss:$0 sm:$0xff] }
  0xc1   : > { %v703_v59 = vsel %vm663_vm3, %v700_v54, %v702_v50  ;;  %v1054_v43 = vadd.f32 %v1038_v25, %v1018_v3  ;;  %v610_v61 = vadd.f32 %v578_v53, %v469_v19  ;;  %v1269_v46 = vsel %vm663_vm3, %v1267_v42, %v1268_v38 }
  0xc2   : > { %1842 = vmatmul.mubr.msk.f32.gmra.mxu1 %vm1335_vm4, %v1324_v20  ;;  %v986_v57 = vrot.slane %v923_v13, 2  ;;  %v1083_v0 = vmul.f32 %v2192_v24, %v446_v58  ;;  %v863_v52 = vsel %vm538_vm2, %v860_v47, %v862_v12  ;;  %v1207_v29 = vmul.f32 %v2222_v51, %v446_v58 }
  0xc3   : > { %v1178_v17 = vadd.f32 %v1145_v14, %v1054_v43  ;;  %v735_v21 = vadd.f32 %v703_v59, %v610_v61  ;;  %v1039_v24 = vmul.f32 %v2181_v18, %v2760_v5  ;;  %v2817_v18 = vld [vmem:[%s2937_s5] ss:$0 sm:$0xff] }
  0xc4   : > { %v987_v1 = vsel %vm663_vm3, %v984_v9, %v986_v57  ;;  %v1146_v54 = vrot.slane %v1083_v0, 1  ;;  %v1270_v60 = vrot.slane %v1207_v29, 2 }
  0xc5   : > { %v1302_v26 = vadd.f32 %v1269_v46, %v1178_v17  ;;  %v771_v48 = vadd.f32 %v755_v16, %v735_v21 }
  0xc6   : > { %v1147_v51 = vsel %vm538_vm2, %v1144_v37, %v1146_v54  ;;  %v1271_v22 = vsel %vm663_vm3, %v1268_v38, %v1270_v60 }
  0xc7   : > { %v1325_v44 = vadd.f32 %v1924_v15, %v1302_v26  ;;  %v895_v45 = vadd.f32 %v863_v52, %v771_v48 }
  0xc9   : > { %1844 = vmatprep.mubr.msk.f32.mxu1 %vm1335_vm4, %v1325_v44  ;;  %v1019_v7 = vadd.f32 %v987_v1, %v895_v45 }
  0xcb   : > { %v1055_v55 = vadd.f32 %v1039_v24, %v1019_v7 }
  0xcd   : > { %v1179_v8 = vadd.f32 %v1147_v51, %v1055_v55 }
  0xcf   : > { %v1303_v2 = vadd.f32 %v1271_v22, %v1179_v8 }
  0xd1   : > { %v1326_v10 = vadd.f32 %v1924_v15, %v1303_v2 }
  0xd3   : > { %1845 = vmatmul.mubr.msk.f32.gmra.mxu1 %vm1335_vm4, %v1326_v10 }
 0x115   : > { %v1825_v5 = vpop.f32.mrf.mxu0 }
 0x116   : > { %v1460_v47 = vadd.f32 %v1825_v5, %v2817_v18 }
 0x117   : > { %v1454_v36 = vpop.f32.mrf.mxu0 }
 0x118   : > { %1576 = vst.msk [vmem:[%s2147_s7 + $0x8] sm:$0xff] %vm1534_vm5, %v1460_v47  ;;  %v1455_v23 = vadd.f32 %v2817_v18, %v1454_v36  ;;  %v1536_v9 = vsel %vm1534_vm5, %v1460_v47, 0.0 }
 0x11a   : > { %v1535_v27 = vsel %vm1534_vm5, %v1455_v23, 0.0  ;;  %1575 = vst.msk [vmem:[%s2147_s7] sm:$0xff] %vm1534_vm5, %v1455_v23 }
 0x11b   : > { %v1537_v56 = vadd.f32 %v1536_v9, %v1535_v27  ;;  %v1533_v27 = vld [vmem:[%s2151_s12] sm:$0x1] }
 0x129   : > { %v1828_v41 = vpop.f32.mrf.mxu0 }
 0x12a   : > { %v1470_v40 = vadd.f32 %v1828_v41, %v2817_v18 }
 0x12b   : > { %v1464_v63 = vpop.f32.mrf.mxu0 }
 0x12c   : > { %1578 = vst.msk [vmem:[%s2147_s7 + $0x18] sm:$0xff] %vm1534_vm5, %v1470_v40  ;;  %v1465_v31 = vadd.f32 %v2817_v18, %v1464_v63  ;;  %v1540_v49 = vsel %vm1534_vm5, %v1470_v40, 0.0 }
 0x12e   : > { %v1538_v34 = vsel %vm1534_vm5, %v1465_v31, 0.0  ;;  %1577 = vst.msk [vmem:[%s2147_s7 + $0x10] sm:$0xff] %vm1534_vm5, %v1465_v31 }
 0x12f   : > { %v1539_v32 = vadd.f32 %v1538_v34, %v1537_v56 }
 0x131   : > { %v1541_v35 = vadd.f32 %v1540_v49, %v1539_v32 }
 0x139   : > { %v1831_v62 = vpop.f32.mrf.mxu0 }
 0x13a   : > { %v1480_v25 = vadd.f32 %v1831_v62, %v2817_v18 }
 0x13b   : > { %v1474_v28 = vpop.f32.mrf.mxu0 }
 0x13c   : > { %1580 = vst.msk [vmem:[%s2147_s7 + $0x28] sm:$0xff] %vm1534_vm5, %v1480_v25  ;;  %v1475_v37 = vadd.f32 %v2817_v18, %v1474_v28  ;;  %v1544_v33 = vsel %vm1534_vm5, %v1480_v25, 0.0 }
 0x13e   : > { %v1542_v30 = vsel %vm1534_vm5, %v1475_v37, 0.0  ;;  %1579 = vst.msk [vmem:[%s2147_s7 + $0x20] sm:$0xff] %vm1534_vm5, %v1475_v37 }
 0x13f   : > { %v1543_v11 = vadd.f32 %v1542_v30, %v1541_v35 }
 0x141   : > { %v1545_v39 = vadd.f32 %v1544_v33, %v1543_v11 }
 0x14c   : > { %v1834_v42 = vpop.f32.mrf.mxu0 }
 0x14d   : > { %v1490_v19 = vadd.f32 %v1834_v42, %v2817_v18 }
 0x14e   : > { %v1484_v38 = vpop.f32.mrf.mxu0 }
 0x14f   : > { %1582 = vst.msk [vmem:[%s2147_s7 + $0x38] sm:$0xff] %vm1534_vm5, %v1490_v19  ;;  %v1485_v6 = vadd.f32 %v2817_v18, %v1484_v38  ;;  %v1548_v43 = vsel %vm1534_vm5, %v1490_v19, 0.0 }
 0x151   : > { %1581 = vst.msk [vmem:[%s2147_s7 + $0x30] sm:$0xff] %vm1534_vm5, %v1485_v6  ;;  %v1546_v59 = vsel %vm1534_vm5, %v1485_v6, 0.0 }
 0x152   : > { %v1547_v12 = vadd.f32 %v1546_v59, %v1545_v39 }
 0x154   : > { %v1549_v61 = vadd.f32 %v1548_v43, %v1547_v12 }
 0x15e   : > { %v1837_v50 = vpop.f32.mrf.mxu1 }
 0x15f   : > { %v1500_v4 = vadd.f32 %v1837_v50, %v2817_v18 }
 0x160   : > { %v1494_v20 = vpop.f32.mrf.mxu1 }
 0x161   : > { %1584 = vst.msk [vmem:[%s2147_s7 + $0x48] sm:$0xff] %vm1534_vm5, %v1500_v4  ;;  %v1495_v3 = vadd.f32 %v2817_v18, %v1494_v20  ;;  %v1552_v21 = vsel %vm1534_vm5, %v1500_v4, 0.0 }
 0x163   : > { %1583 = vst.msk [vmem:[%s2147_s7 + $0x40] sm:$0xff] %vm1534_vm5, %v1495_v3  ;;  %v1550_v16 = vsel %vm1534_vm5, %v1495_v3, 0.0 }
 0x164   : > { %v1551_v46 = vadd.f32 %v1550_v16, %v1549_v61 }
 0x166   : > { %v1553_v29 = vadd.f32 %v1552_v21, %v1551_v46 }
 0x170   : > { %v1840_v58 = vpop.f32.mrf.mxu1 }
 0x171   : > { %v1510_v13 = vadd.f32 %v1840_v58, %v2817_v18 }
 0x172   : > { %v1504_v14 = vpop.f32.mrf.mxu1 }
 0x173   : > { %1586 = vst.msk [vmem:[%s2147_s7 + $0x58] sm:$0xff] %vm1534_vm5, %v1510_v13  ;;  %v1505_v53 = vadd.f32 %v2817_v18, %v1504_v14  ;;  %v1556_v1 = vsel %vm1534_vm5, %v1510_v13, 0.0 }
 0x175   : > { %1585 = vst.msk [vmem:[%s2147_s7 + $0x50] sm:$0xff] %vm1534_vm5, %v1505_v53  ;;  %v1554_v26 = vsel %vm1534_vm5, %v1505_v53, 0.0 }
 0x176   : > { %v1555_v48 = vadd.f32 %v1554_v26, %v1553_v29 }
 0x178   : > { %v1557_v54 = vadd.f32 %v1556_v1, %v1555_v48 }
 0x182   : > { %v1843_v57 = vpop.f32.mrf.mxu1 }
 0x183   : > { %v1520_v0 = vadd.f32 %v1843_v57, %v2817_v18 }
 0x184   : > { %v1514_v17 = vpop.f32.mrf.mxu1 }
 0x185   : > { %1588 = vst.msk [vmem:[%s2147_s7 + $0x68] sm:$0xff] %vm1534_vm5, %v1520_v0  ;;  %v1515_v52 = vadd.f32 %v2817_v18, %v1514_v17  ;;  %v1560_v24 = vsel %vm1534_vm5, %v1520_v0, 0.0 }
 0x187   : > { %1587 = vst.msk [vmem:[%s2147_s7 + $0x60] sm:$0xff] %vm1534_vm5, %v1515_v52  ;;  %v1558_v15 = vsel %vm1534_vm5, %v1515_v52, 0.0 }
 0x188   : > { %v1559_v44 = vadd.f32 %v1558_v15, %v1557_v54 }
 0x18a   : > { %v1561_v51 = vadd.f32 %v1560_v24, %v1559_v44 }
 0x193   : > { %v1846_v45 = vpop.f32.mrf.mxu1 }
 0x194   : > { %v1530_v60 = vadd.f32 %v1846_v45, %v2817_v18 }
 0x195   : > { %v1524_v7 = vpop.f32.mrf.mxu1 }
 0x196   : > { %1590 = vst.msk [vmem:[%s2147_s7 + $0x78] sm:$0xff] %vm1534_vm5, %v1530_v60  ;;  %v1525_v55 = vadd.f32 %v2817_v18, %v1524_v7  ;;  %v1564_v2 = vsel %vm1534_vm5, %v1530_v60, 0.0 }
 0x198   : > { %v1562_v22 = vsel %vm1534_vm5, %v1525_v55, 0.0  ;;  %1589 = vst.msk [vmem:[%s2147_s7 + $0x70] sm:$0xff] %vm1534_vm5, %v1525_v55 }
 0x199   : > { %v1563_v8 = vadd.f32 %v1562_v22, %v1561_v51 }
 0x19b   : > { %v1565_v10 = vadd.f32 %v1564_v2, %v1563_v8 }
 0x19d   : > { %v1566_v5 = vrot.slane %v1565_v10, 4 }
 0x19f   : > { %v1567_v47 = vadd.f32 %v1566_v5, %v1565_v10 }
 0x1a1   : > { %v1568_v36 = vrot.slane %v1567_v47, 2 }
 0x1a3   : > { %v1569_v23 = vadd.f32 %v1568_v36, %v1567_v47 }
 0x1a5   : > { %v1570_v9 = vrot.slane %v1569_v23, 1 }
 0x1a7   : > { %v1571_v18 = vadd.f32 %v1570_v9, %v1569_v23 }
 0x1a9   : > { %v1572_v56 = vadd.f32 %v1571_v18, %v1533_v27 }
 0x1ab   : > { %1574 = vst.msk [vmem:[%s2151_s12] sm:$0x1] %vm1573_vm6, %v1572_v56 }
 0x1ac   : > { %1938 = shalt.err (!%p1935_p11)
}
 0x1ad   : > { %s1939_s17 = scalar_lea.hbm %s1616_s11, 16  ;;  %s1943_s19 = scalar_lea.hbm %s2962_s20, 32 }
 0x1ae   : > { %p1940_p12 = scmp.ne.s32.totalorder %s1616_s11, %s1939_s17  ;;  %p1944_p1 = scmp.lt.s32.totalorder %s1616_s11, %s2962_s20 }
 0x1af   : > { %p1945_p2 = scmp.lt.s32.totalorder %s1943_s19, %s1939_s17 }
 0x1b0   : > { %p1941_p13 = pnand %p1940_p12, %p2110_p3 }
 0x1b1   : > { %p1946_p4 = por %p1945_p2, %p1944_p1 }
 0x1b2   : > { %p1942_p0 = pneg %p1941_p13 }
 0x1b4   : > { %p1947_p5 = pnand %p1946_p4, %p1942_p0 }
 0x1b6   : > { %1950 = shalt.err (!%p1947_p5)
}
 0x1b7   : > { %1852 = dma.vmem_to_hbm [thread:$0]  (%p2110_p3), %s1619_s9, 16, %s1616_s11, %s1602_s29  }
 0x1b8 PF: > { %s2964_s30 = sld [smem:[#allocation9_spill]] }
 0x1b9   : > { %s2965_s14 = sld [smem:[#allocation5_spill]] }
 0x1be   : > { %p1858_p6 = scmp.ge.s32.totalorder %s2964_s30, 2 }
 0x1bf   : > { %s1643_s16 = sand.u32 1, %s2965_s14  }
 0x1c0   : > { %p1855_p7 = pnand %p1858_p6, %p2120_p9  ;;  %s1644_s22 = scalar_lea.sflag [#allocation3], %s1643_s16 }
 0x1c2   : > { %p1856_p8 = pneg %p1855_p7 }
 0x1c4   : > { %1984 = dma.done.wait (%p1856_p8), %s1644_s22, 16  }
 0x1c5   : > { %1986 = vsyncadd (%p1856_p8), %s1644_s22, 4294967280  ;;  %s21_s8 = sadd.s32 1, %s2964_s30   ;;  %s2967_s10 = sld [smem:[#allocation6_spill]] }
 0x1c6   : > { %p18_p10 = scmp.ge.s32.totalorder %s21_s8, 6   ;;  %s2968_s26 = sld [smem:[#allocation13_spill]] }
 0x1c7   : > { %s2969_s27 = sld [smem:[#allocation7_spill]]  ;;  %s2973_s24 = smov %s1993_s25 }
 0x1c8   : > { %s2970_s28 = sld [smem:[#allocation8_spill]]  ;;  %20 = sbr.rel (!%p18_p10) target bundleno = 7 (0x7), region = 98 }
 0x1c9   : > { %s2971_s29 = sld [smem:[#allocation10_spill]] }
 0x1ca   : > { %s2972_s30 = sld [smem:[#allocation11_spill]] }
 0x1cb   : > { %s2974_s25 = smov %s2967_s10 }
 0x1cd   :  { %1648 = vsyncpa [#allocation3], 1 }
 0x1ce   :  { %1650 = vsyncpa [#allocation3 + $0x1], 1 }

</bundles_post_ra>
